<compile_context>
chip_gen: v6e
topology: v6e:2x2x1
jax: 0.10.0
libtpu: 0.0.40
codegen_flags: <defaults>
</compile_context>

<pallas_src>
import jax
import jax.numpy as jnp
from jax import lax
from jax.experimental import pallas as pl
from jax.experimental.pallas import tpu as pltpu


def _round_up(a, m):
    return -(-a // m) * m


def _make_kernel(rs, n_chunks, unroll):
    """Build the kernel for a given inner chunk size (rs rows) and chunk count."""

    def mlp_kernel(x_ref, w1_ref, b1_ref, w2_ref, b2_ref, o_ref):
        # x_ref: (IN, rpt, 128) VMEM, o_ref: (C, rpt, 128) VMEM, params in SMEM.
        in_features, hidden = w1_ref.shape
        n_classes = w2_ref.shape[1]

        # Hoist the ~100 SMEM scalar reads out of the row-chunk loop so the
        # fori_loop body is pure VPU broadcast-FMA work on dense vregs.
        w1s = [[w1_ref[i, j] for i in range(in_features)] for j in range(hidden)]
        b1s = [b1_ref[0, j] for j in range(hidden)]
        w2s = [[w2_ref[j, c] for c in range(n_classes)] for j in range(hidden)]
        b2s = [b2_ref[0, c] for c in range(n_classes)]

        def body(r, carry):
            # rs-row chunk stays vreg-resident (~4 x + 2 hj + 8 acc live vregs
            # at rs=16); aligned to (8,128) tiles so loads/stores are direct.
            r0 = pl.multiple_of(r * rs, rs)
            xs = [x_ref[i, pl.ds(r0, rs), :] for i in range(in_features)]
            acc = [None] * n_classes
            for j in range(hidden):
                hj = xs[0] * w1s[j][0]
                for i in range(1, in_features):
                    hj = hj + xs[i] * w1s[j][i]
                hj = jnp.maximum(hj + b1s[j], 0.0)
                # Fold into the C output accumulators immediately.
                for c in range(n_classes):
                    t = hj * w2s[j][c]
                    acc[c] = t if acc[c] is None else acc[c] + t
            for c in range(n_classes):
                o_ref[c, pl.ds(r0, rs), :] = (acc[c] + b2s[c]).astype(o_ref.dtype)
            return carry

        lax.fori_loop(0, n_chunks, body, 0, unroll=unroll)

    return mlp_kernel


def fc_2d_net_forward(x, w1, b1, w2, b2, *, rows_per_tile=1024):
    """x: (B, 2); w1: (2, H); b1: (1, H); w2: (H, C); b2: (1, C) -> (B, C)."""
    B, in_features = x.shape
    hidden = w1.shape[1]
    n_classes = w2.shape[1]
    lanes = 128

    rows_min = max(1, -(-B // lanes))
    # Cap the tile at ceil(rows/2) so the "parallel" grid has >= 2 steps when
    # possible (v7x megacore), but never below one 8-row sublane tile; for big
    # batches the 1024-row cap keeps DMA at ~85-90% efficiency and the
    # double-buffered footprint (~6 MiB) well inside v7x's scoped VMEM.
    target = min(rows_per_tile, max(8, _round_up(-(-rows_min // 2), 8)))
    rs = 16 if target >= 16 else 8          # vreg-resident inner chunk rows
    rpt = _round_up(target, rs)             # BlockSpec tile rows
    rows = _round_up(rows_min, rpt)
    b_pad = rows * lanes
    n_chunks = rpt // rs
    unroll = n_chunks if n_chunks <= 4 else 2

    # Lane-dense layout: batch index b = row * 128 + lane.  Padded rows compute
    # relu(b1) @ w2 + b2 garbage; they are sliced off before returning.
    # TODO(synk): for large B, keep this lane-dense layout across adjacent ops
    # instead of paying the pad/transpose HBM round trips in the wrapper.
    xt = jnp.zeros((in_features, b_pad), jnp.float32).at[:, :B].set(x.T)
    xr = xt.reshape(in_features, rows, lanes)

    # Constant-index SMEM operands: DMA'd once, not re-fetched per grid step.
    smem = pl.BlockSpec(memory_space=pltpu.MemorySpace.SMEM)
    flops = 2 * b_pad * (in_features * hidden + hidden * n_classes)
    bytes_accessed = 4 * (b_pad * (in_features + n_classes)
                          + in_features * hidden + hidden
                          + hidden * n_classes + n_classes)

    out_r = pl.pallas_call(
        _make_kernel(rs, n_chunks, unroll),
        out_shape=jax.ShapeDtypeStruct((n_classes, rows, lanes), jnp.float32),
        grid=(rows // rpt,),
        in_specs=[
            pl.BlockSpec((in_features, rpt, lanes), lambda i: (0, i, 0)),
            smem,  # w1
            smem,  # b1
            smem,  # w2
            smem,  # b2
        ],
        out_specs=pl.BlockSpec((n_classes, rpt, lanes), lambda i: (0, i, 0)),
        compiler_params=pltpu.CompilerParams(
            dimension_semantics=("parallel",),
        ),
        cost_estimate=pl.CostEstimate(
            flops=flops, transcendentals=0, bytes_accessed=bytes_accessed),
    )(xr, w1, b1, w2, b2)

    # Undo the lane-dense layout for the caller: (C, B_pad) -> (B, C).
    return out_r.reshape(n_classes, b_pad)[:, :B].T


def init_params(key, in_features=2, hidden_units=16, n_classes=4):
    # Mimic nn.Linear's uniform(-1/sqrt(fan_in), 1/sqrt(fan_in)) init; weights
    # stored (in, out) so the kernel computes x @ W + b (== PyTorch x @ W.T + b).
    k1, k2, k3, k4 = jax.random.split(key, 4)
    lim1 = 1.0 / jnp.sqrt(in_features)
    lim2 = 1.0 / jnp.sqrt(hidden_units)
    w1 = jax.random.uniform(k1, (in_features, hidden_units), jnp.float32, -lim1, lim1)
    b1 = jax.random.uniform(k2, (1, hidden_units), jnp.float32, -lim1, lim1)
    w2 = jax.random.uniform(k3, (hidden_units, n_classes), jnp.float32, -lim2, lim2)
    b2 = jax.random.uniform(k4, (1, n_classes), jnp.float32, -lim2, lim2)
    return w1, b1, w2, b2


if __name__ == "__main__":
    key = jax.random.PRNGKey(0)
    k_x, k_p = jax.random.split(key)

    B, IN, H, C = 8, 2, 16, 4
    x = jax.random.normal(k_x, (B, IN), jnp.float32)
    w1, b1, w2, b2 = init_params(k_p, IN, H, C)

    fwd = jax.jit(fc_2d_net_forward)
    out = jax.block_until_ready(fwd(x, w1, b1, w2, b2))

    # Pure-JAX reference of the same forward.
    ref = jnp.maximum(x @ w1 + b1, 0.0) @ w2 + b2
    assert out.shape == (B, C)
    assert jnp.allclose(out, ref, atol=1e-5, rtol=1e-5)
    print("KERNEL_OK")
</pallas_src>

<mosaic_0001>
module attributes {stable_mosaic.version = 11 : i64} {
  func.func @mlp_kernel(%arg0: i32, %arg1: memref<2x8x128xf32, #tpu.memory_space<vmem>>, %arg2: memref<2x16xf32, #tpu.memory_space<smem>>, %arg3: memref<1x16xf32, #tpu.memory_space<smem>>, %arg4: memref<16x4xf32, #tpu.memory_space<smem>>, %arg5: memref<1x4xf32, #tpu.memory_space<smem>>, %arg6: memref<4x8x128xf32, #tpu.memory_space<vmem>>) attributes {dimension_semantics = [#tpu.dimension_semantics<parallel>], iteration_bounds = array<i64: 1>, scalar_prefetch = 0 : i64, scratch_operands = 0 : i64, tpu.core_type = #tpu.core_type<tc>, window_params = [{transform_indices = @transform_0, window_bounds = array<i64: 2, 8, 128>}, {transform_indices = @transform_1, window_bounds = array<i64: 2, 16>}, {transform_indices = @transform_2, window_bounds = array<i64: 1, 16>}, {transform_indices = @transform_3, window_bounds = array<i64: 16, 4>}, {transform_indices = @transform_4, window_bounds = array<i64: 1, 4>}, {transform_indices = @transform_5, window_bounds = array<i64: 4, 8, 128>}]} {
    %c0 = arith.constant 0 : index
    %c0_0 = arith.constant 0 : index
    %0 = memref.load %arg2[%c0, %c0_0] : memref<2x16xf32, #tpu.memory_space<smem>>
    %c1 = arith.constant 1 : index
    %c0_1 = arith.constant 0 : index
    %1 = memref.load %arg2[%c1, %c0_1] : memref<2x16xf32, #tpu.memory_space<smem>>
    %c0_2 = arith.constant 0 : index
    %c1_3 = arith.constant 1 : index
    %2 = memref.load %arg2[%c0_2, %c1_3] : memref<2x16xf32, #tpu.memory_space<smem>>
    %c1_4 = arith.constant 1 : index
    %c1_5 = arith.constant 1 : index
    %3 = memref.load %arg2[%c1_4, %c1_5] : memref<2x16xf32, #tpu.memory_space<smem>>
    %c0_6 = arith.constant 0 : index
    %c2 = arith.constant 2 : index
    %4 = memref.load %arg2[%c0_6, %c2] : memref<2x16xf32, #tpu.memory_space<smem>>
    %c1_7 = arith.constant 1 : index
    %c2_8 = arith.constant 2 : index
    %5 = memref.load %arg2[%c1_7, %c2_8] : memref<2x16xf32, #tpu.memory_space<smem>>
    %c0_9 = arith.constant 0 : index
    %c3 = arith.constant 3 : index
    %6 = memref.load %arg2[%c0_9, %c3] : memref<2x16xf32, #tpu.memory_space<smem>>
    %c1_10 = arith.constant 1 : index
    %c3_11 = arith.constant 3 : index
    %7 = memref.load %arg2[%c1_10, %c3_11] : memref<2x16xf32, #tpu.memory_space<smem>>
    %c0_12 = arith.constant 0 : index
    %c4 = arith.constant 4 : index
    %8 = memref.load %arg2[%c0_12, %c4] : memref<2x16xf32, #tpu.memory_space<smem>>
    %c1_13 = arith.constant 1 : index
    %c4_14 = arith.constant 4 : index
    %9 = memref.load %arg2[%c1_13, %c4_14] : memref<2x16xf32, #tpu.memory_space<smem>>
    %c0_15 = arith.constant 0 : index
    %c5 = arith.constant 5 : index
    %10 = memref.load %arg2[%c0_15, %c5] : memref<2x16xf32, #tpu.memory_space<smem>>
    %c1_16 = arith.constant 1 : index
    %c5_17 = arith.constant 5 : index
    %11 = memref.load %arg2[%c1_16, %c5_17] : memref<2x16xf32, #tpu.memory_space<smem>>
    %c0_18 = arith.constant 0 : index
    %c6 = arith.constant 6 : index
    %12 = memref.load %arg2[%c0_18, %c6] : memref<2x16xf32, #tpu.memory_space<smem>>
    %c1_19 = arith.constant 1 : index
    %c6_20 = arith.constant 6 : index
    %13 = memref.load %arg2[%c1_19, %c6_20] : memref<2x16xf32, #tpu.memory_space<smem>>
    %c0_21 = arith.constant 0 : index
    %c7 = arith.constant 7 : index
    %14 = memref.load %arg2[%c0_21, %c7] : memref<2x16xf32, #tpu.memory_space<smem>>
    %c1_22 = arith.constant 1 : index
    %c7_23 = arith.constant 7 : index
    %15 = memref.load %arg2[%c1_22, %c7_23] : memref<2x16xf32, #tpu.memory_space<smem>>
    %c0_24 = arith.constant 0 : index
    %c8 = arith.constant 8 : index
    %16 = memref.load %arg2[%c0_24, %c8] : memref<2x16xf32, #tpu.memory_space<smem>>
    %c1_25 = arith.constant 1 : index
    %c8_26 = arith.constant 8 : index
    %17 = memref.load %arg2[%c1_25, %c8_26] : memref<2x16xf32, #tpu.memory_space<smem>>
    %c0_27 = arith.constant 0 : index
    %c9 = arith.constant 9 : index
    %18 = memref.load %arg2[%c0_27, %c9] : memref<2x16xf32, #tpu.memory_space<smem>>
    %c1_28 = arith.constant 1 : index
    %c9_29 = arith.constant 9 : index
    %19 = memref.load %arg2[%c1_28, %c9_29] : memref<2x16xf32, #tpu.memory_space<smem>>
    %c0_30 = arith.constant 0 : index
    %c10 = arith.constant 10 : index
    %20 = memref.load %arg2[%c0_30, %c10] : memref<2x16xf32, #tpu.memory_space<smem>>
    %c1_31 = arith.constant 1 : index
    %c10_32 = arith.constant 10 : index
    %21 = memref.load %arg2[%c1_31, %c10_32] : memref<2x16xf32, #tpu.memory_space<smem>>
    %c0_33 = arith.constant 0 : index
    %c11 = arith.constant 11 : index
    %22 = memref.load %arg2[%c0_33, %c11] : memref<2x16xf32, #tpu.memory_space<smem>>
    %c1_34 = arith.constant 1 : index
    %c11_35 = arith.constant 11 : index
    %23 = memref.load %arg2[%c1_34, %c11_35] : memref<2x16xf32, #tpu.memory_space<smem>>
    %c0_36 = arith.constant 0 : index
    %c12 = arith.constant 12 : index
    %24 = memref.load %arg2[%c0_36, %c12] : memref<2x16xf32, #tpu.memory_space<smem>>
    %c1_37 = arith.constant 1 : index
    %c12_38 = arith.constant 12 : index
    %25 = memref.load %arg2[%c1_37, %c12_38] : memref<2x16xf32, #tpu.memory_space<smem>>
    %c0_39 = arith.constant 0 : index
    %c13 = arith.constant 13 : index
    %26 = memref.load %arg2[%c0_39, %c13] : memref<2x16xf32, #tpu.memory_space<smem>>
    %c1_40 = arith.constant 1 : index
    %c13_41 = arith.constant 13 : index
    %27 = memref.load %arg2[%c1_40, %c13_41] : memref<2x16xf32, #tpu.memory_space<smem>>
    %c0_42 = arith.constant 0 : index
    %c14 = arith.constant 14 : index
    %28 = memref.load %arg2[%c0_42, %c14] : memref<2x16xf32, #tpu.memory_space<smem>>
    %c1_43 = arith.constant 1 : index
    %c14_44 = arith.constant 14 : index
    %29 = memref.load %arg2[%c1_43, %c14_44] : memref<2x16xf32, #tpu.memory_space<smem>>
    %c0_45 = arith.constant 0 : index
    %c15 = arith.constant 15 : index
    %30 = memref.load %arg2[%c0_45, %c15] : memref<2x16xf32, #tpu.memory_space<smem>>
    %c1_46 = arith.constant 1 : index
    %c15_47 = arith.constant 15 : index
    %31 = memref.load %arg2[%c1_46, %c15_47] : memref<2x16xf32, #tpu.memory_space<smem>>
    %c0_48 = arith.constant 0 : index
    %c0_49 = arith.constant 0 : index
    %32 = memref.load %arg3[%c0_48, %c0_49] : memref<1x16xf32, #tpu.memory_space<smem>>
    %c0_50 = arith.constant 0 : index
    %c1_51 = arith.constant 1 : index
    %33 = memref.load %arg3[%c0_50, %c1_51] : memref<1x16xf32, #tpu.memory_space<smem>>
    %c0_52 = arith.constant 0 : index
    %c2_53 = arith.constant 2 : index
    %34 = memref.load %arg3[%c0_52, %c2_53] : memref<1x16xf32, #tpu.memory_space<smem>>
    %c0_54 = arith.constant 0 : index
    %c3_55 = arith.constant 3 : index
    %35 = memref.load %arg3[%c0_54, %c3_55] : memref<1x16xf32, #tpu.memory_space<smem>>
    %c0_56 = arith.constant 0 : index
    %c4_57 = arith.constant 4 : index
    %36 = memref.load %arg3[%c0_56, %c4_57] : memref<1x16xf32, #tpu.memory_space<smem>>
    %c0_58 = arith.constant 0 : index
    %c5_59 = arith.constant 5 : index
    %37 = memref.load %arg3[%c0_58, %c5_59] : memref<1x16xf32, #tpu.memory_space<smem>>
    %c0_60 = arith.constant 0 : index
    %c6_61 = arith.constant 6 : index
    %38 = memref.load %arg3[%c0_60, %c6_61] : memref<1x16xf32, #tpu.memory_space<smem>>
    %c0_62 = arith.constant 0 : index
    %c7_63 = arith.constant 7 : index
    %39 = memref.load %arg3[%c0_62, %c7_63] : memref<1x16xf32, #tpu.memory_space<smem>>
    %c0_64 = arith.constant 0 : index
    %c8_65 = arith.constant 8 : index
    %40 = memref.load %arg3[%c0_64, %c8_65] : memref<1x16xf32, #tpu.memory_space<smem>>
    %c0_66 = arith.constant 0 : index
    %c9_67 = arith.constant 9 : index
    %41 = memref.load %arg3[%c0_66, %c9_67] : memref<1x16xf32, #tpu.memory_space<smem>>
    %c0_68 = arith.constant 0 : index
    %c10_69 = arith.constant 10 : index
    %42 = memref.load %arg3[%c0_68, %c10_69] : memref<1x16xf32, #tpu.memory_space<smem>>
    %c0_70 = arith.constant 0 : index
    %c11_71 = arith.constant 11 : index
    %43 = memref.load %arg3[%c0_70, %c11_71] : memref<1x16xf32, #tpu.memory_space<smem>>
    %c0_72 = arith.constant 0 : index
    %c12_73 = arith.constant 12 : index
    %44 = memref.load %arg3[%c0_72, %c12_73] : memref<1x16xf32, #tpu.memory_space<smem>>
    %c0_74 = arith.constant 0 : index
    %c13_75 = arith.constant 13 : index
    %45 = memref.load %arg3[%c0_74, %c13_75] : memref<1x16xf32, #tpu.memory_space<smem>>
    %c0_76 = arith.constant 0 : index
    %c14_77 = arith.constant 14 : index
    %46 = memref.load %arg3[%c0_76, %c14_77] : memref<1x16xf32, #tpu.memory_space<smem>>
    %c0_78 = arith.constant 0 : index
    %c15_79 = arith.constant 15 : index
    %47 = memref.load %arg3[%c0_78, %c15_79] : memref<1x16xf32, #tpu.memory_space<smem>>
    %c0_80 = arith.constant 0 : index
    %c0_81 = arith.constant 0 : index
    %48 = memref.load %arg4[%c0_80, %c0_81] : memref<16x4xf32, #tpu.memory_space<smem>>
    %c0_82 = arith.constant 0 : index
    %c1_83 = arith.constant 1 : index
    %49 = memref.load %arg4[%c0_82, %c1_83] : memref<16x4xf32, #tpu.memory_space<smem>>
    %c0_84 = arith.constant 0 : index
    %c2_85 = arith.constant 2 : index
    %50 = memref.load %arg4[%c0_84, %c2_85] : memref<16x4xf32, #tpu.memory_space<smem>>
    %c0_86 = arith.constant 0 : index
    %c3_87 = arith.constant 3 : index
    %51 = memref.load %arg4[%c0_86, %c3_87] : memref<16x4xf32, #tpu.memory_space<smem>>
    %c1_88 = arith.constant 1 : index
    %c0_89 = arith.constant 0 : index
    %52 = memref.load %arg4[%c1_88, %c0_89] : memref<16x4xf32, #tpu.memory_space<smem>>
    %c1_90 = arith.constant 1 : index
    %c1_91 = arith.constant 1 : index
    %53 = memref.load %arg4[%c1_90, %c1_91] : memref<16x4xf32, #tpu.memory_space<smem>>
    %c1_92 = arith.constant 1 : index
    %c2_93 = arith.constant 2 : index
    %54 = memref.load %arg4[%c1_92, %c2_93] : memref<16x4xf32, #tpu.memory_space<smem>>
    %c1_94 = arith.constant 1 : index
    %c3_95 = arith.constant 3 : index
    %55 = memref.load %arg4[%c1_94, %c3_95] : memref<16x4xf32, #tpu.memory_space<smem>>
    %c2_96 = arith.constant 2 : index
    %c0_97 = arith.constant 0 : index
    %56 = memref.load %arg4[%c2_96, %c0_97] : memref<16x4xf32, #tpu.memory_space<smem>>
    %c2_98 = arith.constant 2 : index
    %c1_99 = arith.constant 1 : index
    %57 = memref.load %arg4[%c2_98, %c1_99] : memref<16x4xf32, #tpu.memory_space<smem>>
    %c2_100 = arith.constant 2 : index
    %c2_101 = arith.constant 2 : index
    %58 = memref.load %arg4[%c2_100, %c2_101] : memref<16x4xf32, #tpu.memory_space<smem>>
    %c2_102 = arith.constant 2 : index
    %c3_103 = arith.constant 3 : index
    %59 = memref.load %arg4[%c2_102, %c3_103] : memref<16x4xf32, #tpu.memory_space<smem>>
    %c3_104 = arith.constant 3 : index
    %c0_105 = arith.constant 0 : index
    %60 = memref.load %arg4[%c3_104, %c0_105] : memref<16x4xf32, #tpu.memory_space<smem>>
    %c3_106 = arith.constant 3 : index
    %c1_107 = arith.constant 1 : index
    %61 = memref.load %arg4[%c3_106, %c1_107] : memref<16x4xf32, #tpu.memory_space<smem>>
    %c3_108 = arith.constant 3 : index
    %c2_109 = arith.constant 2 : index
    %62 = memref.load %arg4[%c3_108, %c2_109] : memref<16x4xf32, #tpu.memory_space<smem>>
    %c3_110 = arith.constant 3 : index
    %c3_111 = arith.constant 3 : index
    %63 = memref.load %arg4[%c3_110, %c3_111] : memref<16x4xf32, #tpu.memory_space<smem>>
    %c4_112 = arith.constant 4 : index
    %c0_113 = arith.constant 0 : index
    %64 = memref.load %arg4[%c4_112, %c0_113] : memref<16x4xf32, #tpu.memory_space<smem>>
    %c4_114 = arith.constant 4 : index
    %c1_115 = arith.constant 1 : index
    %65 = memref.load %arg4[%c4_114, %c1_115] : memref<16x4xf32, #tpu.memory_space<smem>>
    %c4_116 = arith.constant 4 : index
    %c2_117 = arith.constant 2 : index
    %66 = memref.load %arg4[%c4_116, %c2_117] : memref<16x4xf32, #tpu.memory_space<smem>>
    %c4_118 = arith.constant 4 : index
    %c3_119 = arith.constant 3 : index
    %67 = memref.load %arg4[%c4_118, %c3_119] : memref<16x4xf32, #tpu.memory_space<smem>>
    %c5_120 = arith.constant 5 : index
    %c0_121 = arith.constant 0 : index
    %68 = memref.load %arg4[%c5_120, %c0_121] : memref<16x4xf32, #tpu.memory_space<smem>>
    %c5_122 = arith.constant 5 : index
    %c1_123 = arith.constant 1 : index
    %69 = memref.load %arg4[%c5_122, %c1_123] : memref<16x4xf32, #tpu.memory_space<smem>>
    %c5_124 = arith.constant 5 : index
    %c2_125 = arith.constant 2 : index
    %70 = memref.load %arg4[%c5_124, %c2_125] : memref<16x4xf32, #tpu.memory_space<smem>>
    %c5_126 = arith.constant 5 : index
    %c3_127 = arith.constant 3 : index
    %71 = memref.load %arg4[%c5_126, %c3_127] : memref<16x4xf32, #tpu.memory_space<smem>>
    %c6_128 = arith.constant 6 : index
    %c0_129 = arith.constant 0 : index
    %72 = memref.load %arg4[%c6_128, %c0_129] : memref<16x4xf32, #tpu.memory_space<smem>>
    %c6_130 = arith.constant 6 : index
    %c1_131 = arith.constant 1 : index
    %73 = memref.load %arg4[%c6_130, %c1_131] : memref<16x4xf32, #tpu.memory_space<smem>>
    %c6_132 = arith.constant 6 : index
    %c2_133 = arith.constant 2 : index
    %74 = memref.load %arg4[%c6_132, %c2_133] : memref<16x4xf32, #tpu.memory_space<smem>>
    %c6_134 = arith.constant 6 : index
    %c3_135 = arith.constant 3 : index
    %75 = memref.load %arg4[%c6_134, %c3_135] : memref<16x4xf32, #tpu.memory_space<smem>>
    %c7_136 = arith.constant 7 : index
    %c0_137 = arith.constant 0 : index
    %76 = memref.load %arg4[%c7_136, %c0_137] : memref<16x4xf32, #tpu.memory_space<smem>>
    %c7_138 = arith.constant 7 : index
    %c1_139 = arith.constant 1 : index
    %77 = memref.load %arg4[%c7_138, %c1_139] : memref<16x4xf32, #tpu.memory_space<smem>>
    %c7_140 = arith.constant 7 : index
    %c2_141 = arith.constant 2 : index
    %78 = memref.load %arg4[%c7_140, %c2_141] : memref<16x4xf32, #tpu.memory_space<smem>>
    %c7_142 = arith.constant 7 : index
    %c3_143 = arith.constant 3 : index
    %79 = memref.load %arg4[%c7_142, %c3_143] : memref<16x4xf32, #tpu.memory_space<smem>>
    %c8_144 = arith.constant 8 : index
    %c0_145 = arith.constant 0 : index
    %80 = memref.load %arg4[%c8_144, %c0_145] : memref<16x4xf32, #tpu.memory_space<smem>>
    %c8_146 = arith.constant 8 : index
    %c1_147 = arith.constant 1 : index
    %81 = memref.load %arg4[%c8_146, %c1_147] : memref<16x4xf32, #tpu.memory_space<smem>>
    %c8_148 = arith.constant 8 : index
    %c2_149 = arith.constant 2 : index
    %82 = memref.load %arg4[%c8_148, %c2_149] : memref<16x4xf32, #tpu.memory_space<smem>>
    %c8_150 = arith.constant 8 : index
    %c3_151 = arith.constant 3 : index
    %83 = memref.load %arg4[%c8_150, %c3_151] : memref<16x4xf32, #tpu.memory_space<smem>>
    %c9_152 = arith.constant 9 : index
    %c0_153 = arith.constant 0 : index
    %84 = memref.load %arg4[%c9_152, %c0_153] : memref<16x4xf32, #tpu.memory_space<smem>>
    %c9_154 = arith.constant 9 : index
    %c1_155 = arith.constant 1 : index
    %85 = memref.load %arg4[%c9_154, %c1_155] : memref<16x4xf32, #tpu.memory_space<smem>>
    %c9_156 = arith.constant 9 : index
    %c2_157 = arith.constant 2 : index
    %86 = memref.load %arg4[%c9_156, %c2_157] : memref<16x4xf32, #tpu.memory_space<smem>>
    %c9_158 = arith.constant 9 : index
    %c3_159 = arith.constant 3 : index
    %87 = memref.load %arg4[%c9_158, %c3_159] : memref<16x4xf32, #tpu.memory_space<smem>>
    %c10_160 = arith.constant 10 : index
    %c0_161 = arith.constant 0 : index
    %88 = memref.load %arg4[%c10_160, %c0_161] : memref<16x4xf32, #tpu.memory_space<smem>>
    %c10_162 = arith.constant 10 : index
    %c1_163 = arith.constant 1 : index
    %89 = memref.load %arg4[%c10_162, %c1_163] : memref<16x4xf32, #tpu.memory_space<smem>>
    %c10_164 = arith.constant 10 : index
    %c2_165 = arith.constant 2 : index
    %90 = memref.load %arg4[%c10_164, %c2_165] : memref<16x4xf32, #tpu.memory_space<smem>>
    %c10_166 = arith.constant 10 : index
    %c3_167 = arith.constant 3 : index
    %91 = memref.load %arg4[%c10_166, %c3_167] : memref<16x4xf32, #tpu.memory_space<smem>>
    %c11_168 = arith.constant 11 : index
    %c0_169 = arith.constant 0 : index
    %92 = memref.load %arg4[%c11_168, %c0_169] : memref<16x4xf32, #tpu.memory_space<smem>>
    %c11_170 = arith.constant 11 : index
    %c1_171 = arith.constant 1 : index
    %93 = memref.load %arg4[%c11_170, %c1_171] : memref<16x4xf32, #tpu.memory_space<smem>>
    %c11_172 = arith.constant 11 : index
    %c2_173 = arith.constant 2 : index
    %94 = memref.load %arg4[%c11_172, %c2_173] : memref<16x4xf32, #tpu.memory_space<smem>>
    %c11_174 = arith.constant 11 : index
    %c3_175 = arith.constant 3 : index
    %95 = memref.load %arg4[%c11_174, %c3_175] : memref<16x4xf32, #tpu.memory_space<smem>>
    %c12_176 = arith.constant 12 : index
    %c0_177 = arith.constant 0 : index
    %96 = memref.load %arg4[%c12_176, %c0_177] : memref<16x4xf32, #tpu.memory_space<smem>>
    %c12_178 = arith.constant 12 : index
    %c1_179 = arith.constant 1 : index
    %97 = memref.load %arg4[%c12_178, %c1_179] : memref<16x4xf32, #tpu.memory_space<smem>>
    %c12_180 = arith.constant 12 : index
    %c2_181 = arith.constant 2 : index
    %98 = memref.load %arg4[%c12_180, %c2_181] : memref<16x4xf32, #tpu.memory_space<smem>>
    %c12_182 = arith.constant 12 : index
    %c3_183 = arith.constant 3 : index
    %99 = memref.load %arg4[%c12_182, %c3_183] : memref<16x4xf32, #tpu.memory_space<smem>>
    %c13_184 = arith.constant 13 : index
    %c0_185 = arith.constant 0 : index
    %100 = memref.load %arg4[%c13_184, %c0_185] : memref<16x4xf32, #tpu.memory_space<smem>>
    %c13_186 = arith.constant 13 : index
    %c1_187 = arith.constant 1 : index
    %101 = memref.load %arg4[%c13_186, %c1_187] : memref<16x4xf32, #tpu.memory_space<smem>>
    %c13_188 = arith.constant 13 : index
    %c2_189 = arith.constant 2 : index
    %102 = memref.load %arg4[%c13_188, %c2_189] : memref<16x4xf32, #tpu.memory_space<smem>>
    %c13_190 = arith.constant 13 : index
    %c3_191 = arith.constant 3 : index
    %103 = memref.load %arg4[%c13_190, %c3_191] : memref<16x4xf32, #tpu.memory_space<smem>>
    %c14_192 = arith.constant 14 : index
    %c0_193 = arith.constant 0 : index
    %104 = memref.load %arg4[%c14_192, %c0_193] : memref<16x4xf32, #tpu.memory_space<smem>>
    %c14_194 = arith.constant 14 : index
    %c1_195 = arith.constant 1 : index
    %105 = memref.load %arg4[%c14_194, %c1_195] : memref<16x4xf32, #tpu.memory_space<smem>>
    %c14_196 = arith.constant 14 : index
    %c2_197 = arith.constant 2 : index
    %106 = memref.load %arg4[%c14_196, %c2_197] : memref<16x4xf32, #tpu.memory_space<smem>>
    %c14_198 = arith.constant 14 : index
    %c3_199 = arith.constant 3 : index
    %107 = memref.load %arg4[%c14_198, %c3_199] : memref<16x4xf32, #tpu.memory_space<smem>>
    %c15_200 = arith.constant 15 : index
    %c0_201 = arith.constant 0 : index
    %108 = memref.load %arg4[%c15_200, %c0_201] : memref<16x4xf32, #tpu.memory_space<smem>>
    %c15_202 = arith.constant 15 : index
    %c1_203 = arith.constant 1 : index
    %109 = memref.load %arg4[%c15_202, %c1_203] : memref<16x4xf32, #tpu.memory_space<smem>>
    %c15_204 = arith.constant 15 : index
    %c2_205 = arith.constant 2 : index
    %110 = memref.load %arg4[%c15_204, %c2_205] : memref<16x4xf32, #tpu.memory_space<smem>>
    %c15_206 = arith.constant 15 : index
    %c3_207 = arith.constant 3 : index
    %111 = memref.load %arg4[%c15_206, %c3_207] : memref<16x4xf32, #tpu.memory_space<smem>>
    %c0_208 = arith.constant 0 : index
    %c0_209 = arith.constant 0 : index
    %112 = memref.load %arg5[%c0_208, %c0_209] : memref<1x4xf32, #tpu.memory_space<smem>>
    %c0_210 = arith.constant 0 : index
    %c1_211 = arith.constant 1 : index
    %113 = memref.load %arg5[%c0_210, %c1_211] : memref<1x4xf32, #tpu.memory_space<smem>>
    %c0_212 = arith.constant 0 : index
    %c2_213 = arith.constant 2 : index
    %114 = memref.load %arg5[%c0_212, %c2_213] : memref<1x4xf32, #tpu.memory_space<smem>>
    %c0_214 = arith.constant 0 : index
    %c3_215 = arith.constant 3 : index
    %115 = memref.load %arg5[%c0_214, %c3_215] : memref<1x4xf32, #tpu.memory_space<smem>>
    %c0_i32 = arith.constant 0 : i32
    %c8_i32 = arith.constant 8 : i32
    %116 = arith.muli %c0_i32, %c8_i32 : i32
    %117 = tpu.assume_multiple %116, 8 : i32
    %c0_216 = arith.constant 0 : index
    %118 = arith.index_cast %117 : i32 to index
    %c0_217 = arith.constant 0 : index
    %119 = vector.load %arg1[%c0_216, %118, %c0_217] : memref<2x8x128xf32, #tpu.memory_space<vmem>>, vector<1x8x128xf32>
    %120 = vector.shape_cast %119 : vector<1x8x128xf32> to vector<8x128xf32>
    %c1_218 = arith.constant 1 : index
    %121 = arith.index_cast %117 : i32 to index
    %c0_219 = arith.constant 0 : index
    %122 = vector.load %arg1[%c1_218, %121, %c0_219] : memref<2x8x128xf32, #tpu.memory_space<vmem>>, vector<1x8x128xf32>
    %123 = vector.shape_cast %122 : vector<1x8x128xf32> to vector<8x128xf32>
    %124 = vector.broadcast %0 : f32 to vector<8x128xf32>
    %125 = arith.mulf %120, %124 : vector<8x128xf32>
    %126 = vector.broadcast %1 : f32 to vector<8x128xf32>
    %127 = arith.mulf %123, %126 : vector<8x128xf32>
    %128 = arith.addf %125, %127 : vector<8x128xf32>
    %129 = vector.broadcast %32 : f32 to vector<8x128xf32>
    %130 = arith.addf %128, %129 : vector<8x128xf32>
    %cst = arith.constant 0.000000e+00 : f32
    %131 = vector.broadcast %cst : f32 to vector<8x128xf32>
    %132 = arith.maximumf %130, %131 : vector<8x128xf32>
    %133 = vector.broadcast %48 : f32 to vector<8x128xf32>
    %134 = arith.mulf %132, %133 : vector<8x128xf32>
    %135 = vector.broadcast %49 : f32 to vector<8x128xf32>
    %136 = arith.mulf %132, %135 : vector<8x128xf32>
    %137 = vector.broadcast %50 : f32 to vector<8x128xf32>
    %138 = arith.mulf %132, %137 : vector<8x128xf32>
    %139 = vector.broadcast %51 : f32 to vector<8x128xf32>
    %140 = arith.mulf %132, %139 : vector<8x128xf32>
    %141 = vector.broadcast %2 : f32 to vector<8x128xf32>
    %142 = arith.mulf %120, %141 : vector<8x128xf32>
    %143 = vector.broadcast %3 : f32 to vector<8x128xf32>
    %144 = arith.mulf %123, %143 : vector<8x128xf32>
    %145 = arith.addf %142, %144 : vector<8x128xf32>
    %146 = vector.broadcast %33 : f32 to vector<8x128xf32>
    %147 = arith.addf %145, %146 : vector<8x128xf32>
    %cst_220 = arith.constant 0.000000e+00 : f32
    %148 = vector.broadcast %cst_220 : f32 to vector<8x128xf32>
    %149 = arith.maximumf %147, %148 : vector<8x128xf32>
    %150 = vector.broadcast %52 : f32 to vector<8x128xf32>
    %151 = arith.mulf %149, %150 : vector<8x128xf32>
    %152 = arith.addf %134, %151 : vector<8x128xf32>
    %153 = vector.broadcast %53 : f32 to vector<8x128xf32>
    %154 = arith.mulf %149, %153 : vector<8x128xf32>
    %155 = arith.addf %136, %154 : vector<8x128xf32>
    %156 = vector.broadcast %54 : f32 to vector<8x128xf32>
    %157 = arith.mulf %149, %156 : vector<8x128xf32>
    %158 = arith.addf %138, %157 : vector<8x128xf32>
    %159 = vector.broadcast %55 : f32 to vector<8x128xf32>
    %160 = arith.mulf %149, %159 : vector<8x128xf32>
    %161 = arith.addf %140, %160 : vector<8x128xf32>
    %162 = vector.broadcast %4 : f32 to vector<8x128xf32>
    %163 = arith.mulf %120, %162 : vector<8x128xf32>
    %164 = vector.broadcast %5 : f32 to vector<8x128xf32>
    %165 = arith.mulf %123, %164 : vector<8x128xf32>
    %166 = arith.addf %163, %165 : vector<8x128xf32>
    %167 = vector.broadcast %34 : f32 to vector<8x128xf32>
    %168 = arith.addf %166, %167 : vector<8x128xf32>
    %cst_221 = arith.constant 0.000000e+00 : f32
    %169 = vector.broadcast %cst_221 : f32 to vector<8x128xf32>
    %170 = arith.maximumf %168, %169 : vector<8x128xf32>
    %171 = vector.broadcast %56 : f32 to vector<8x128xf32>
    %172 = arith.mulf %170, %171 : vector<8x128xf32>
    %173 = arith.addf %152, %172 : vector<8x128xf32>
    %174 = vector.broadcast %57 : f32 to vector<8x128xf32>
    %175 = arith.mulf %170, %174 : vector<8x128xf32>
    %176 = arith.addf %155, %175 : vector<8x128xf32>
    %177 = vector.broadcast %58 : f32 to vector<8x128xf32>
    %178 = arith.mulf %170, %177 : vector<8x128xf32>
    %179 = arith.addf %158, %178 : vector<8x128xf32>
    %180 = vector.broadcast %59 : f32 to vector<8x128xf32>
    %181 = arith.mulf %170, %180 : vector<8x128xf32>
    %182 = arith.addf %161, %181 : vector<8x128xf32>
    %183 = vector.broadcast %6 : f32 to vector<8x128xf32>
    %184 = arith.mulf %120, %183 : vector<8x128xf32>
    %185 = vector.broadcast %7 : f32 to vector<8x128xf32>
    %186 = arith.mulf %123, %185 : vector<8x128xf32>
    %187 = arith.addf %184, %186 : vector<8x128xf32>
    %188 = vector.broadcast %35 : f32 to vector<8x128xf32>
    %189 = arith.addf %187, %188 : vector<8x128xf32>
    %cst_222 = arith.constant 0.000000e+00 : f32
    %190 = vector.broadcast %cst_222 : f32 to vector<8x128xf32>
    %191 = arith.maximumf %189, %190 : vector<8x128xf32>
    %192 = vector.broadcast %60 : f32 to vector<8x128xf32>
    %193 = arith.mulf %191, %192 : vector<8x128xf32>
    %194 = arith.addf %173, %193 : vector<8x128xf32>
    %195 = vector.broadcast %61 : f32 to vector<8x128xf32>
    %196 = arith.mulf %191, %195 : vector<8x128xf32>
    %197 = arith.addf %176, %196 : vector<8x128xf32>
    %198 = vector.broadcast %62 : f32 to vector<8x128xf32>
    %199 = arith.mulf %191, %198 : vector<8x128xf32>
    %200 = arith.addf %179, %199 : vector<8x128xf32>
    %201 = vector.broadcast %63 : f32 to vector<8x128xf32>
    %202 = arith.mulf %191, %201 : vector<8x128xf32>
    %203 = arith.addf %182, %202 : vector<8x128xf32>
    %204 = vector.broadcast %8 : f32 to vector<8x128xf32>
    %205 = arith.mulf %120, %204 : vector<8x128xf32>
    %206 = vector.broadcast %9 : f32 to vector<8x128xf32>
    %207 = arith.mulf %123, %206 : vector<8x128xf32>
    %208 = arith.addf %205, %207 : vector<8x128xf32>
    %209 = vector.broadcast %36 : f32 to vector<8x128xf32>
    %210 = arith.addf %208, %209 : vector<8x128xf32>
    %cst_223 = arith.constant 0.000000e+00 : f32
    %211 = vector.broadcast %cst_223 : f32 to vector<8x128xf32>
    %212 = arith.maximumf %210, %211 : vector<8x128xf32>
    %213 = vector.broadcast %64 : f32 to vector<8x128xf32>
    %214 = arith.mulf %212, %213 : vector<8x128xf32>
    %215 = arith.addf %194, %214 : vector<8x128xf32>
    %216 = vector.broadcast %65 : f32 to vector<8x128xf32>
    %217 = arith.mulf %212, %216 : vector<8x128xf32>
    %218 = arith.addf %197, %217 : vector<8x128xf32>
    %219 = vector.broadcast %66 : f32 to vector<8x128xf32>
    %220 = arith.mulf %212, %219 : vector<8x128xf32>
    %221 = arith.addf %200, %220 : vector<8x128xf32>
    %222 = vector.broadcast %67 : f32 to vector<8x128xf32>
    %223 = arith.mulf %212, %222 : vector<8x128xf32>
    %224 = arith.addf %203, %223 : vector<8x128xf32>
    %225 = vector.broadcast %10 : f32 to vector<8x128xf32>
    %226 = arith.mulf %120, %225 : vector<8x128xf32>
    %227 = vector.broadcast %11 : f32 to vector<8x128xf32>
    %228 = arith.mulf %123, %227 : vector<8x128xf32>
    %229 = arith.addf %226, %228 : vector<8x128xf32>
    %230 = vector.broadcast %37 : f32 to vector<8x128xf32>
    %231 = arith.addf %229, %230 : vector<8x128xf32>
    %cst_224 = arith.constant 0.000000e+00 : f32
    %232 = vector.broadcast %cst_224 : f32 to vector<8x128xf32>
    %233 = arith.maximumf %231, %232 : vector<8x128xf32>
    %234 = vector.broadcast %68 : f32 to vector<8x128xf32>
    %235 = arith.mulf %233, %234 : vector<8x128xf32>
    %236 = arith.addf %215, %235 : vector<8x128xf32>
    %237 = vector.broadcast %69 : f32 to vector<8x128xf32>
    %238 = arith.mulf %233, %237 : vector<8x128xf32>
    %239 = arith.addf %218, %238 : vector<8x128xf32>
    %240 = vector.broadcast %70 : f32 to vector<8x128xf32>
    %241 = arith.mulf %233, %240 : vector<8x128xf32>
    %242 = arith.addf %221, %241 : vector<8x128xf32>
    %243 = vector.broadcast %71 : f32 to vector<8x128xf32>
    %244 = arith.mulf %233, %243 : vector<8x128xf32>
    %245 = arith.addf %224, %244 : vector<8x128xf32>
    %246 = vector.broadcast %12 : f32 to vector<8x128xf32>
    %247 = arith.mulf %120, %246 : vector<8x128xf32>
    %248 = vector.broadcast %13 : f32 to vector<8x128xf32>
    %249 = arith.mulf %123, %248 : vector<8x128xf32>
    %250 = arith.addf %247, %249 : vector<8x128xf32>
    %251 = vector.broadcast %38 : f32 to vector<8x128xf32>
    %252 = arith.addf %250, %251 : vector<8x128xf32>
    %cst_225 = arith.constant 0.000000e+00 : f32
    %253 = vector.broadcast %cst_225 : f32 to vector<8x128xf32>
    %254 = arith.maximumf %252, %253 : vector<8x128xf32>
    %255 = vector.broadcast %72 : f32 to vector<8x128xf32>
    %256 = arith.mulf %254, %255 : vector<8x128xf32>
    %257 = arith.addf %236, %256 : vector<8x128xf32>
    %258 = vector.broadcast %73 : f32 to vector<8x128xf32>
    %259 = arith.mulf %254, %258 : vector<8x128xf32>
    %260 = arith.addf %239, %259 : vector<8x128xf32>
    %261 = vector.broadcast %74 : f32 to vector<8x128xf32>
    %262 = arith.mulf %254, %261 : vector<8x128xf32>
    %263 = arith.addf %242, %262 : vector<8x128xf32>
    %264 = vector.broadcast %75 : f32 to vector<8x128xf32>
    %265 = arith.mulf %254, %264 : vector<8x128xf32>
    %266 = arith.addf %245, %265 : vector<8x128xf32>
    %267 = vector.broadcast %14 : f32 to vector<8x128xf32>
    %268 = arith.mulf %120, %267 : vector<8x128xf32>
    %269 = vector.broadcast %15 : f32 to vector<8x128xf32>
    %270 = arith.mulf %123, %269 : vector<8x128xf32>
    %271 = arith.addf %268, %270 : vector<8x128xf32>
    %272 = vector.broadcast %39 : f32 to vector<8x128xf32>
    %273 = arith.addf %271, %272 : vector<8x128xf32>
    %cst_226 = arith.constant 0.000000e+00 : f32
    %274 = vector.broadcast %cst_226 : f32 to vector<8x128xf32>
    %275 = arith.maximumf %273, %274 : vector<8x128xf32>
    %276 = vector.broadcast %76 : f32 to vector<8x128xf32>
    %277 = arith.mulf %275, %276 : vector<8x128xf32>
    %278 = arith.addf %257, %277 : vector<8x128xf32>
    %279 = vector.broadcast %77 : f32 to vector<8x128xf32>
    %280 = arith.mulf %275, %279 : vector<8x128xf32>
    %281 = arith.addf %260, %280 : vector<8x128xf32>
    %282 = vector.broadcast %78 : f32 to vector<8x128xf32>
    %283 = arith.mulf %275, %282 : vector<8x128xf32>
    %284 = arith.addf %263, %283 : vector<8x128xf32>
    %285 = vector.broadcast %79 : f32 to vector<8x128xf32>
    %286 = arith.mulf %275, %285 : vector<8x128xf32>
    %287 = arith.addf %266, %286 : vector<8x128xf32>
    %288 = vector.broadcast %16 : f32 to vector<8x128xf32>
    %289 = arith.mulf %120, %288 : vector<8x128xf32>
    %290 = vector.broadcast %17 : f32 to vector<8x128xf32>
    %291 = arith.mulf %123, %290 : vector<8x128xf32>
    %292 = arith.addf %289, %291 : vector<8x128xf32>
    %293 = vector.broadcast %40 : f32 to vector<8x128xf32>
    %294 = arith.addf %292, %293 : vector<8x128xf32>
    %cst_227 = arith.constant 0.000000e+00 : f32
    %295 = vector.broadcast %cst_227 : f32 to vector<8x128xf32>
    %296 = arith.maximumf %294, %295 : vector<8x128xf32>
    %297 = vector.broadcast %80 : f32 to vector<8x128xf32>
    %298 = arith.mulf %296, %297 : vector<8x128xf32>
    %299 = arith.addf %278, %298 : vector<8x128xf32>
    %300 = vector.broadcast %81 : f32 to vector<8x128xf32>
    %301 = arith.mulf %296, %300 : vector<8x128xf32>
    %302 = arith.addf %281, %301 : vector<8x128xf32>
    %303 = vector.broadcast %82 : f32 to vector<8x128xf32>
    %304 = arith.mulf %296, %303 : vector<8x128xf32>
    %305 = arith.addf %284, %304 : vector<8x128xf32>
    %306 = vector.broadcast %83 : f32 to vector<8x128xf32>
    %307 = arith.mulf %296, %306 : vector<8x128xf32>
    %308 = arith.addf %287, %307 : vector<8x128xf32>
    %309 = vector.broadcast %18 : f32 to vector<8x128xf32>
    %310 = arith.mulf %120, %309 : vector<8x128xf32>
    %311 = vector.broadcast %19 : f32 to vector<8x128xf32>
    %312 = arith.mulf %123, %311 : vector<8x128xf32>
    %313 = arith.addf %310, %312 : vector<8x128xf32>
    %314 = vector.broadcast %41 : f32 to vector<8x128xf32>
    %315 = arith.addf %313, %314 : vector<8x128xf32>
    %cst_228 = arith.constant 0.000000e+00 : f32
    %316 = vector.broadcast %cst_228 : f32 to vector<8x128xf32>
    %317 = arith.maximumf %315, %316 : vector<8x128xf32>
    %318 = vector.broadcast %84 : f32 to vector<8x128xf32>
    %319 = arith.mulf %317, %318 : vector<8x128xf32>
    %320 = arith.addf %299, %319 : vector<8x128xf32>
    %321 = vector.broadcast %85 : f32 to vector<8x128xf32>
    %322 = arith.mulf %317, %321 : vector<8x128xf32>
    %323 = arith.addf %302, %322 : vector<8x128xf32>
    %324 = vector.broadcast %86 : f32 to vector<8x128xf32>
    %325 = arith.mulf %317, %324 : vector<8x128xf32>
    %326 = arith.addf %305, %325 : vector<8x128xf32>
    %327 = vector.broadcast %87 : f32 to vector<8x128xf32>
    %328 = arith.mulf %317, %327 : vector<8x128xf32>
    %329 = arith.addf %308, %328 : vector<8x128xf32>
    %330 = vector.broadcast %20 : f32 to vector<8x128xf32>
    %331 = arith.mulf %120, %330 : vector<8x128xf32>
    %332 = vector.broadcast %21 : f32 to vector<8x128xf32>
    %333 = arith.mulf %123, %332 : vector<8x128xf32>
    %334 = arith.addf %331, %333 : vector<8x128xf32>
    %335 = vector.broadcast %42 : f32 to vector<8x128xf32>
    %336 = arith.addf %334, %335 : vector<8x128xf32>
    %cst_229 = arith.constant 0.000000e+00 : f32
    %337 = vector.broadcast %cst_229 : f32 to vector<8x128xf32>
    %338 = arith.maximumf %336, %337 : vector<8x128xf32>
    %339 = vector.broadcast %88 : f32 to vector<8x128xf32>
    %340 = arith.mulf %338, %339 : vector<8x128xf32>
    %341 = arith.addf %320, %340 : vector<8x128xf32>
    %342 = vector.broadcast %89 : f32 to vector<8x128xf32>
    %343 = arith.mulf %338, %342 : vector<8x128xf32>
    %344 = arith.addf %323, %343 : vector<8x128xf32>
    %345 = vector.broadcast %90 : f32 to vector<8x128xf32>
    %346 = arith.mulf %338, %345 : vector<8x128xf32>
    %347 = arith.addf %326, %346 : vector<8x128xf32>
    %348 = vector.broadcast %91 : f32 to vector<8x128xf32>
    %349 = arith.mulf %338, %348 : vector<8x128xf32>
    %350 = arith.addf %329, %349 : vector<8x128xf32>
    %351 = vector.broadcast %22 : f32 to vector<8x128xf32>
    %352 = arith.mulf %120, %351 : vector<8x128xf32>
    %353 = vector.broadcast %23 : f32 to vector<8x128xf32>
    %354 = arith.mulf %123, %353 : vector<8x128xf32>
    %355 = arith.addf %352, %354 : vector<8x128xf32>
    %356 = vector.broadcast %43 : f32 to vector<8x128xf32>
    %357 = arith.addf %355, %356 : vector<8x128xf32>
    %cst_230 = arith.constant 0.000000e+00 : f32
    %358 = vector.broadcast %cst_230 : f32 to vector<8x128xf32>
    %359 = arith.maximumf %357, %358 : vector<8x128xf32>
    %360 = vector.broadcast %92 : f32 to vector<8x128xf32>
    %361 = arith.mulf %359, %360 : vector<8x128xf32>
    %362 = arith.addf %341, %361 : vector<8x128xf32>
    %363 = vector.broadcast %93 : f32 to vector<8x128xf32>
    %364 = arith.mulf %359, %363 : vector<8x128xf32>
    %365 = arith.addf %344, %364 : vector<8x128xf32>
    %366 = vector.broadcast %94 : f32 to vector<8x128xf32>
    %367 = arith.mulf %359, %366 : vector<8x128xf32>
    %368 = arith.addf %347, %367 : vector<8x128xf32>
    %369 = vector.broadcast %95 : f32 to vector<8x128xf32>
    %370 = arith.mulf %359, %369 : vector<8x128xf32>
    %371 = arith.addf %350, %370 : vector<8x128xf32>
    %372 = vector.broadcast %24 : f32 to vector<8x128xf32>
    %373 = arith.mulf %120, %372 : vector<8x128xf32>
    %374 = vector.broadcast %25 : f32 to vector<8x128xf32>
    %375 = arith.mulf %123, %374 : vector<8x128xf32>
    %376 = arith.addf %373, %375 : vector<8x128xf32>
    %377 = vector.broadcast %44 : f32 to vector<8x128xf32>
    %378 = arith.addf %376, %377 : vector<8x128xf32>
    %cst_231 = arith.constant 0.000000e+00 : f32
    %379 = vector.broadcast %cst_231 : f32 to vector<8x128xf32>
    %380 = arith.maximumf %378, %379 : vector<8x128xf32>
    %381 = vector.broadcast %96 : f32 to vector<8x128xf32>
    %382 = arith.mulf %380, %381 : vector<8x128xf32>
    %383 = arith.addf %362, %382 : vector<8x128xf32>
    %384 = vector.broadcast %97 : f32 to vector<8x128xf32>
    %385 = arith.mulf %380, %384 : vector<8x128xf32>
    %386 = arith.addf %365, %385 : vector<8x128xf32>
    %387 = vector.broadcast %98 : f32 to vector<8x128xf32>
    %388 = arith.mulf %380, %387 : vector<8x128xf32>
    %389 = arith.addf %368, %388 : vector<8x128xf32>
    %390 = vector.broadcast %99 : f32 to vector<8x128xf32>
    %391 = arith.mulf %380, %390 : vector<8x128xf32>
    %392 = arith.addf %371, %391 : vector<8x128xf32>
    %393 = vector.broadcast %26 : f32 to vector<8x128xf32>
    %394 = arith.mulf %120, %393 : vector<8x128xf32>
    %395 = vector.broadcast %27 : f32 to vector<8x128xf32>
    %396 = arith.mulf %123, %395 : vector<8x128xf32>
    %397 = arith.addf %394, %396 : vector<8x128xf32>
    %398 = vector.broadcast %45 : f32 to vector<8x128xf32>
    %399 = arith.addf %397, %398 : vector<8x128xf32>
    %cst_232 = arith.constant 0.000000e+00 : f32
    %400 = vector.broadcast %cst_232 : f32 to vector<8x128xf32>
    %401 = arith.maximumf %399, %400 : vector<8x128xf32>
    %402 = vector.broadcast %100 : f32 to vector<8x128xf32>
    %403 = arith.mulf %401, %402 : vector<8x128xf32>
    %404 = arith.addf %383, %403 : vector<8x128xf32>
    %405 = vector.broadcast %101 : f32 to vector<8x128xf32>
    %406 = arith.mulf %401, %405 : vector<8x128xf32>
    %407 = arith.addf %386, %406 : vector<8x128xf32>
    %408 = vector.broadcast %102 : f32 to vector<8x128xf32>
    %409 = arith.mulf %401, %408 : vector<8x128xf32>
    %410 = arith.addf %389, %409 : vector<8x128xf32>
    %411 = vector.broadcast %103 : f32 to vector<8x128xf32>
    %412 = arith.mulf %401, %411 : vector<8x128xf32>
    %413 = arith.addf %392, %412 : vector<8x128xf32>
    %414 = vector.broadcast %28 : f32 to vector<8x128xf32>
    %415 = arith.mulf %120, %414 : vector<8x128xf32>
    %416 = vector.broadcast %29 : f32 to vector<8x128xf32>
    %417 = arith.mulf %123, %416 : vector<8x128xf32>
    %418 = arith.addf %415, %417 : vector<8x128xf32>
    %419 = vector.broadcast %46 : f32 to vector<8x128xf32>
    %420 = arith.addf %418, %419 : vector<8x128xf32>
    %cst_233 = arith.constant 0.000000e+00 : f32
    %421 = vector.broadcast %cst_233 : f32 to vector<8x128xf32>
    %422 = arith.maximumf %420, %421 : vector<8x128xf32>
    %423 = vector.broadcast %104 : f32 to vector<8x128xf32>
    %424 = arith.mulf %422, %423 : vector<8x128xf32>
    %425 = arith.addf %404, %424 : vector<8x128xf32>
    %426 = vector.broadcast %105 : f32 to vector<8x128xf32>
    %427 = arith.mulf %422, %426 : vector<8x128xf32>
    %428 = arith.addf %407, %427 : vector<8x128xf32>
    %429 = vector.broadcast %106 : f32 to vector<8x128xf32>
    %430 = arith.mulf %422, %429 : vector<8x128xf32>
    %431 = arith.addf %410, %430 : vector<8x128xf32>
    %432 = vector.broadcast %107 : f32 to vector<8x128xf32>
    %433 = arith.mulf %422, %432 : vector<8x128xf32>
    %434 = arith.addf %413, %433 : vector<8x128xf32>
    %435 = vector.broadcast %30 : f32 to vector<8x128xf32>
    %436 = arith.mulf %120, %435 : vector<8x128xf32>
    %437 = vector.broadcast %31 : f32 to vector<8x128xf32>
    %438 = arith.mulf %123, %437 : vector<8x128xf32>
    %439 = arith.addf %436, %438 : vector<8x128xf32>
    %440 = vector.broadcast %47 : f32 to vector<8x128xf32>
    %441 = arith.addf %439, %440 : vector<8x128xf32>
    %cst_234 = arith.constant 0.000000e+00 : f32
    %442 = vector.broadcast %cst_234 : f32 to vector<8x128xf32>
    %443 = arith.maximumf %441, %442 : vector<8x128xf32>
    %444 = vector.broadcast %108 : f32 to vector<8x128xf32>
    %445 = arith.mulf %443, %444 : vector<8x128xf32>
    %446 = arith.addf %425, %445 : vector<8x128xf32>
    %447 = vector.broadcast %109 : f32 to vector<8x128xf32>
    %448 = arith.mulf %443, %447 : vector<8x128xf32>
    %449 = arith.addf %428, %448 : vector<8x128xf32>
    %450 = vector.broadcast %110 : f32 to vector<8x128xf32>
    %451 = arith.mulf %443, %450 : vector<8x128xf32>
    %452 = arith.addf %431, %451 : vector<8x128xf32>
    %453 = vector.broadcast %111 : f32 to vector<8x128xf32>
    %454 = arith.mulf %443, %453 : vector<8x128xf32>
    %455 = arith.addf %434, %454 : vector<8x128xf32>
    %456 = vector.broadcast %112 : f32 to vector<8x128xf32>
    %457 = arith.addf %446, %456 : vector<8x128xf32>
    %c0_235 = arith.constant 0 : index
    %458 = arith.index_cast %117 : i32 to index
    %c0_236 = arith.constant 0 : index
    %459 = vector.load %arg6[%c0_235, %458, %c0_236] : memref<4x8x128xf32, #tpu.memory_space<vmem>>, vector<1x8x128xf32>
    %460 = vector.shape_cast %459 : vector<1x8x128xf32> to vector<8x128xf32>
    %461 = vector.shape_cast %457 : vector<8x128xf32> to vector<1x8x128xf32>
    tpu.vector_store %arg6[%c0_235, %458, %c0_236], %461 {strides = array<i32>} : memref<4x8x128xf32, #tpu.memory_space<vmem>>, vector<1x8x128xf32>,
    %462 = vector.broadcast %113 : f32 to vector<8x128xf32>
    %463 = arith.addf %449, %462 : vector<8x128xf32>
    %c1_237 = arith.constant 1 : index
    %464 = arith.index_cast %117 : i32 to index
    %c0_238 = arith.constant 0 : index
    %465 = vector.load %arg6[%c1_237, %464, %c0_238] : memref<4x8x128xf32, #tpu.memory_space<vmem>>, vector<1x8x128xf32>
    %466 = vector.shape_cast %465 : vector<1x8x128xf32> to vector<8x128xf32>
    %467 = vector.shape_cast %463 : vector<8x128xf32> to vector<1x8x128xf32>
    tpu.vector_store %arg6[%c1_237, %464, %c0_238], %467 {strides = array<i32>} : memref<4x8x128xf32, #tpu.memory_space<vmem>>, vector<1x8x128xf32>,
    %468 = vector.broadcast %114 : f32 to vector<8x128xf32>
    %469 = arith.addf %452, %468 : vector<8x128xf32>
    %c2_239 = arith.constant 2 : index
    %470 = arith.index_cast %117 : i32 to index
    %c0_240 = arith.constant 0 : index
    %471 = vector.load %arg6[%c2_239, %470, %c0_240] : memref<4x8x128xf32, #tpu.memory_space<vmem>>, vector<1x8x128xf32>
    %472 = vector.shape_cast %471 : vector<1x8x128xf32> to vector<8x128xf32>
    %473 = vector.shape_cast %469 : vector<8x128xf32> to vector<1x8x128xf32>
    tpu.vector_store %arg6[%c2_239, %470, %c0_240], %473 {strides = array<i32>} : memref<4x8x128xf32, #tpu.memory_space<vmem>>, vector<1x8x128xf32>,
    %474 = vector.broadcast %115 : f32 to vector<8x128xf32>
    %475 = arith.addf %455, %474 : vector<8x128xf32>
    %c3_241 = arith.constant 3 : index
    %476 = arith.index_cast %117 : i32 to index
    %c0_242 = arith.constant 0 : index
    %477 = vector.load %arg6[%c3_241, %476, %c0_242] : memref<4x8x128xf32, #tpu.memory_space<vmem>>, vector<1x8x128xf32>
    %478 = vector.shape_cast %477 : vector<1x8x128xf32> to vector<8x128xf32>
    %479 = vector.shape_cast %475 : vector<8x128xf32> to vector<1x8x128xf32>
    tpu.vector_store %arg6[%c3_241, %476, %c0_242], %479 {strides = array<i32>} : memref<4x8x128xf32, #tpu.memory_space<vmem>>, vector<1x8x128xf32>,
    %c1_i32 = arith.constant 1 : i32
    return
  }
  func.func @transform_0(%arg0: i32) -> (i32, i32, i32) {
    %c0_i32 = arith.constant 0 : i32
    %c0_i32_0 = arith.constant 0 : i32
    %c0_i32_1 = arith.constant 0 : i32
    return %c0_i32, %arg0, %c0_i32_0 : i32, i32, i32
  }
  func.func @transform_1(%arg0: i32) -> (i32, i32) {
    %c0_i32 = arith.constant 0 : i32
    %c0_i32_0 = arith.constant 0 : i32
    %c0_i32_1 = arith.constant 0 : i32
    return %c0_i32, %c0_i32_0 : i32, i32
  }
  func.func @transform_2(%arg0: i32) -> (i32, i32) {
    %c0_i32 = arith.constant 0 : i32
    %c0_i32_0 = arith.constant 0 : i32
    %c0_i32_1 = arith.constant 0 : i32
    return %c0_i32, %c0_i32_0 : i32, i32
  }
  func.func @transform_3(%arg0: i32) -> (i32, i32) {
    %c0_i32 = arith.constant 0 : i32
    %c0_i32_0 = arith.constant 0 : i32
    %c0_i32_1 = arith.constant 0 : i32
    return %c0_i32, %c0_i32_0 : i32, i32
  }
  func.func @transform_4(%arg0: i32) -> (i32, i32) {
    %c0_i32 = arith.constant 0 : i32
    %c0_i32_0 = arith.constant 0 : i32
    %c0_i32_1 = arith.constant 0 : i32
    return %c0_i32, %c0_i32_0 : i32, i32
  }
  func.func @transform_5(%arg0: i32) -> (i32, i32, i32) {
    %c0_i32 = arith.constant 0 : i32
    %c0_i32_0 = arith.constant 0 : i32
    %c0_i32_1 = arith.constant 0 : i32
    return %c0_i32, %arg0, %c0_i32_0 : i32, i32, i32
  }
}

</mosaic_0001>

<bundles_post_ra>
// kernel: fc_2d_net_forward.1
= control target key start
LH: loop header
LB: loop body
LE: loop exit
PB: predicated region body
PF: predicated region fallthrough
CT: control target
= control target key end

     0   :  { %s1187_s0 = inlined_call_operand.vmem [shape: f32[2,8,128], index: 0, kind: input, shape index: {}]   ;;  %s1188_s1 = inlined_call_operand.vmem [shape: f32[2,16], index: 1, kind: input, shape index: {}]   ;;  %s1189_s2 = inlined_call_operand.vmem [shape: f32[1,16], index: 2, kind: input, shape index: {}]   ;;  %s1190_s3 = inlined_call_operand.vmem [shape: f32[16,4], index: 3, kind: input, shape index: {}]   ;;  %s1191_s4 = inlined_call_operand.vmem [shape: f32[1,4], index: 4, kind: input, shape index: {}]   ;;  %s1192_s5 = inlined_call_operand.vmem [shape: f32[4,8,128], index: 5, kind: output, shape index: {}]  }
   0x1   :  { %1194 = sst [smem:[#allocation25_spill]] %s1192_s5 }
   0x2   :  { %10 = vsyncpa [#allocation3], 0 }
   0x3   :  { %11 = vsyncpa [#allocation5], 0  ;;  %s31_s20 = sshll.u32 %s1189_s2, 4  ;;  %s32_s20 = int_to_ptr.vmem [resolvable:$true] %s31_s20 }
   0x4   :  { %12 = vsyncpa [#allocation8], 0  ;;  %s21_s23 = sshll.u32 %s1188_s1, 4  ;;  %s656_s24 = scalar_lea.vmem %s32_s20, 16  ;;  %s22_s23 = int_to_ptr.vmem [resolvable:$true] %s21_s23 }
   0x5   :  { %p657_p0 = scmp.ne.s32.totalorder %s32_s20, %s656_s24  ;;  %p661_p1 = scmp.lt.s32.totalorder %s32_s20, %s32_s20 }
   0x6   :  { %p662_p2 = scmp.lt.s32.totalorder %s656_s24, %s656_s24 }
   0x8   :  { %p663_p3 = por %p662_p2, %p661_p1 }
   0xa   :  { %p664_p4 = pnand %p663_p3, %p657_p0 }
   0xc   :  { %667 = shalt.err (!%p664_p4)
}
   0xd   :  { %s710_s25 = smov [#allocation4]   ;;  %s668_s26 = scalar_lea.vmem %s22_s23, 32 }
   0xe   :  { %34 = dma.vmem_to_smem %s32_s20, 16, %s710_s25, [#allocation5]  }
   0xf   :  { %p669_p5 = scmp.ne.s32.totalorder %s22_s23, %s668_s26  ;;  %p673_p6 = scmp.lt.s32.totalorder %s22_s23, %s22_s23 }
  0x10   :  { %p674_p7 = scmp.lt.s32.totalorder %s668_s26, %s668_s26 }
  0x12   :  { %p675_p8 = por %p674_p7, %p673_p6 }
  0x14   :  { %p676_p9 = pnand %p675_p8, %p669_p5 }
  0x16   :  { %679 = shalt.err (!%p676_p9)
}
  0x17   :  { %s711_s2 = smov [#allocation2]   ;;  %s40_s28 = sshll.u32 %s1190_s3, 4  ;;  %s41_s28 = int_to_ptr.vmem [resolvable:$true] %s40_s28 }
  0x18   :  { %24 = dma.vmem_to_smem %s22_s23, 32, %s711_s2, [#allocation3]  }
  0x19   :  { %s53_s6 = sshll.u32 %s1191_s4, 4  ;;  %s680_s7 = scalar_lea.vmem %s41_s28, 256  ;;  %s54_s6 = int_to_ptr.vmem [resolvable:$true] %s53_s6 }
  0x1a   :  { %p681_p10 = scmp.ne.s32.totalorder %s41_s28, %s680_s7  ;;  %p685_p11 = scmp.lt.s32.totalorder %s41_s28, %s41_s28 }
  0x1b   :  { %p686_p12 = scmp.lt.s32.totalorder %s680_s7, %s680_s7 }
  0x1d   :  { %p687_p13 = por %p686_p12, %p685_p11 }
  0x1f   :  { %p688_p0 = pnand %p687_p13, %p681_p10 }
  0x21   :  { %691 = shalt.err (!%p688_p0)
}
  0x22   :  { %s712_s8 = smov [#allocation6]   ;;  %s713_s9 = smov 128  }
  0x23   :  { %s714_s10 = smov 8   ;;  %s692_s11 = scalar_lea.vmem %s54_s6, 16 }
  0x24   :  { %46 = dma.vmem_to_smem %s41_s28, 256, %s712_s8, [#allocation5], %s713_s9, %s713_s9, %s714_s10  }
  0x25   :  { %p693_p1 = scmp.ne.s32.totalorder %s54_s6, %s692_s11  ;;  %p697_p2 = scmp.lt.s32.totalorder %s54_s6, %s54_s6 }
  0x26   :  { %p698_p3 = scmp.lt.s32.totalorder %s692_s11, %s692_s11 }
  0x28   :  { %p699_p4 = por %p698_p3, %p697_p2 }
  0x2a   :  { %p700_p5 = pnand %p699_p4, %p693_p1 }
  0x2c   :  { %703 = shalt.err (!%p700_p5)
}
  0x2d   :  { %s715_s3 = smov [#allocation7]  }
  0x2e   :  { %56 = dma.vmem_to_smem %s54_s6, 16, %s715_s3, [#allocation8]  }
  0x2f   :  { %704 = dma.done.wait [#allocation3], 32  }
  0x30   :  { %705 = vsyncadd [#allocation3], 4294967264 }
  0x31   :  { %706 = dma.done.wait [#allocation5], 272  }
  0x32   :  { %707 = vsyncadd [#allocation5], 4294967024 }
  0x33   :  { %708 = dma.done.wait [#allocation8], 16  }
  0x34   :  { %709 = vsyncadd [#allocation8], 4294967280 }
  0x35   :  { %69 = sfence }
  0x36   :  { %s758_s4 = sld [smem:[#allocation2]]  ;;  %v835_v0 = vld [vmem:[%s1187_s0] sm:$0xff]  ;;  %v840_v1 = vld [vmem:[%s1187_s0 + $0x8] sm:$0xff] }
  0x37   :  { %s760_s12 = sld [smem:[#allocation2 + $0x80]] }
  0x38   :  { %s762_s13 = sld [smem:[#allocation2 + $0x1]] }
  0x39   :  { %s764_s14 = sld [smem:[#allocation2 + $0x81]] }
  0x3a   :  { %s766_s15 = sld [smem:[#allocation2 + $0x2]] }
  0x3b   :  { %s768_s16 = sld [smem:[#allocation2 + $0x82]] }
  0x3c   :  { %s770_s17 = sld [smem:[#allocation2 + $0x3]]  ;;  %v190_v2 = vstv %s758_s4 }
  0x3d   :  { %s772_s18 = sld [smem:[#allocation2 + $0x83]]  ;;  %v192_v3 = vstv %s760_s12  ;;  %v191_v12 = vmul.f32 %v190_v2, %v835_v0 }
  0x3e   :  { %s774_s19 = sld [smem:[#allocation2 + $0x4]]  ;;  %v206_v4 = vstv %s762_s13  ;;  %v193_v13 = vmul.f32 %v840_v1, %v192_v3 }
  0x3f   :  { %s776_s20 = sld [smem:[#allocation2 + $0x84]]  ;;  %v208_v5 = vstv %s764_s14  ;;  %v207_v16 = vmul.f32 %v206_v4, %v835_v0 }
  0x40   :  { %s778_s21 = sld [smem:[#allocation2 + $0x5]]  ;;  %v226_v6 = vstv %s766_s15  ;;  %v209_v17 = vmul.f32 %v840_v1, %v208_v5  ;;  %v194_v26 = vadd.f32 %v193_v13, %v191_v12 }
  0x41   :  { %s780_s22 = sld [smem:[#allocation2 + $0x85]]  ;;  %v228_v7 = vstv %s768_s16  ;;  %v227_v18 = vmul.f32 %v226_v6, %v835_v0 }
  0x42   :  { %s782_s23 = sld [smem:[#allocation2 + $0x6]]  ;;  %v246_v8 = vstv %s770_s17  ;;  %v229_v19 = vmul.f32 %v840_v1, %v228_v7  ;;  %v210_v29 = vadd.f32 %v209_v17, %v207_v16 }
  0x43   :  { %s784_s24 = sld [smem:[#allocation2 + $0x86]]  ;;  %v248_v9 = vstv %s772_s18  ;;  %v247_v20 = vmul.f32 %v246_v8, %v835_v0 }
  0x44   :  { %s786_s25 = sld [smem:[#allocation2 + $0x7]]  ;;  %v266_v10 = vstv %s774_s19  ;;  %v249_v21 = vmul.f32 %v840_v1, %v248_v9  ;;  %v230_v30 = vadd.f32 %v229_v19, %v227_v18 }
  0x45   :  { %s788_s26 = sld [smem:[#allocation2 + $0x87]]  ;;  %v268_v11 = vstv %s776_s20  ;;  %v267_v22 = vmul.f32 %v266_v10, %v835_v0 }
  0x46   :  { %s790_s2 = sld [smem:[#allocation2 + $0x8]]  ;;  %v286_v14 = vstv %s778_s21  ;;  %v269_v23 = vmul.f32 %v840_v1, %v268_v11  ;;  %v888_v33 = vadd.f32 %v249_v21, %v247_v20 }
  0x47   :  { %s792_s1 = sld [smem:[#allocation2 + $0x88]]  ;;  %v288_v15 = vstv %s780_s22  ;;  %v287_v24 = vmul.f32 %v286_v14, %v835_v0 }
  0x48   :  { %s794_s27 = sld [smem:[#allocation2 + $0x9]]  ;;  %v289_v25 = vmul.f32 %v840_v1, %v288_v15  ;;  %v306_v27 = vstv %s782_s23  ;;  %v890_v34 = vadd.f32 %v269_v23, %v267_v22 }
  0x49   :  { %s796_s28 = sld [smem:[#allocation2 + $0x89]]  ;;  %v308_v28 = vstv %s784_s24  ;;  %v307_v39 = vmul.f32 %v306_v27, %v835_v0 }
  0x4a   :  { %s798_s29 = sld [smem:[#allocation2 + $0xa]]  ;;  %v326_v31 = vstv %s786_s25  ;;  %v897_v38 = vadd.f32 %v289_v25, %v287_v24  ;;  %v309_v40 = vmul.f32 %v840_v1, %v308_v28 }
  0x4b   :  { %s800_s30 = sld [smem:[#allocation2 + $0x8a]]  ;;  %v328_v32 = vstv %s788_s26  ;;  %v327_v41 = vmul.f32 %v326_v31, %v835_v0 }
  0x4c   :  { %s802_s6 = sld [smem:[#allocation2 + $0xb]]  ;;  %v346_v35 = vstv %s790_s2  ;;  %v329_v42 = vmul.f32 %v840_v1, %v328_v32  ;;  %v926_v58 = vadd.f32 %v309_v40, %v307_v39 }
  0x4d   :  { %s804_s7 = sld [smem:[#allocation2 + $0x8b]]  ;;  %v348_v36 = vstv %s792_s1  ;;  %v347_v46 = vmul.f32 %v346_v35, %v835_v0 }
  0x4e   :  { %s806_s8 = sld [smem:[#allocation2 + $0xc]]  ;;  %v366_v43 = vstv %s794_s27  ;;  %v349_v47 = vmul.f32 %v840_v1, %v348_v36  ;;  %v928_v59 = vadd.f32 %v329_v42, %v327_v41 }
  0x4f   :  { %s808_s9 = sld [smem:[#allocation2 + $0x8c]]  ;;  %v368_v44 = vstv %s796_s28  ;;  %v367_v53 = vmul.f32 %v366_v43, %v835_v0 }
  0x50   :  { %s810_s10 = sld [smem:[#allocation2 + $0xd]]  ;;  %v386_v48 = vstv %s798_s29  ;;  %v369_v54 = vmul.f32 %v840_v1, %v368_v44  ;;  %v945_v8 = vadd.f32 %v349_v47, %v347_v46 }
  0x51   :  { %1195 = sst [smem:[#allocation12_spill]] %s800_s30  ;;  %v387_v60 = vmul.f32 %v386_v48, %v835_v0 }
  0x52   :  { %1196 = sst [smem:[#allocation13_spill]] %s802_s6  ;;  %v947_v9 = vadd.f32 %v369_v54, %v367_v53 }
  0x53   :  { %1197 = sst [smem:[#allocation14_spill]] %s804_s7 }
  0x54   :  { %1198 = sst [smem:[#allocation15_spill]] %s806_s8 }
  0x55   :  { %1199 = sst [smem:[#allocation16_spill]] %s808_s9 }
  0x56   :  { %1200 = sst [smem:[#allocation17_spill]] %s810_s10 }
  0x57   :  { %s812_s11 = sld [smem:[#allocation2 + $0x8d]] }
  0x58   :  { %s814_s3 = sld [smem:[#allocation2 + $0xe]] }
  0x59   :  { %s816_s5 = sld [smem:[#allocation2 + $0x8e]] }
  0x5a   :  { %s818_s6 = sld [smem:[#allocation2 + $0xf]] }
  0x5b   :  { %s820_s7 = sld [smem:[#allocation2 + $0x8f]] }
  0x5c   :  { %s822_s8 = sld [smem:[#allocation4]] }
  0x5d   :  { %1201 = sst [smem:[#allocation18_spill]] %s812_s11 }
  0x5e   :  { %1202 = sst [smem:[#allocation19_spill]] %s814_s3 }
  0x5f   :  { %1203 = sst [smem:[#allocation20_spill]] %s816_s5 }
  0x60   :  { %1204 = sst [smem:[#allocation21_spill]] %s818_s6 }
  0x61   :  { %1205 = sst [smem:[#allocation22_spill]] %s820_s7 }
  0x62   :  { %s824_s9 = sld [smem:[#allocation4 + $0x1]]  ;;  %v195_v37 = vstv %s822_s8 }
  0x63   :  { %s826_s10 = sld [smem:[#allocation4 + $0x2]]  ;;  %v196_v49 = vadd.f32 %v195_v37, %v194_v26 }
  0x64   :  { %s828_s11 = sld [smem:[#allocation4 + $0x3]] }
  0x65   :  { %s830_s3 = sld [smem:[#allocation4 + $0x4]]  ;;  %v197_v3 = vmax.f32 %v196_v49, 0.0 }
  0x66   :  { %s856_s5 = sld [smem:[#allocation4 + $0x7]] }
  0x67   :  { %s862_s0 = sld [smem:[#allocation4 + $0x8]] }
  0x68   :  { %s868_s4 = sld [smem:[#allocation4 + $0x9]]  ;;  %v211_v45 = vstv %s824_s9 }
  0x69   :  { %1206 = sst [smem:[#allocation23_spill]] %s826_s10  ;;  %v212_v57 = vadd.f32 %v211_v45, %v210_v29 }
  0x6a   :  { %s844_s10 = sld [smem:[#allocation4 + $0x5]]  ;;  %v251_v14 = vstv %s828_s11 }
  0x6b   :  { %1207 = sst [smem:[#allocation24_spill]] %s830_s3  ;;  %v213_v12 = vmax.f32 %v212_v57, 0.0  ;;  %v252_v25 = vadd.f32 %v251_v14, %v888_v33 }
  0x6c   :  { %s850_s3 = sld [smem:[#allocation4 + $0x6]] }
  0x6d   :  { %s874_s12 = sld [smem:[#allocation4 + $0xa]]  ;;  %v253_v48 = vmax.f32 %v252_v25, 0.0 }
  0x6e   :  { %s878_s13 = sld [smem:[#allocation4 + $0xb]] }
  0x6f   :  { %s882_s14 = sld [smem:[#allocation4 + $0xc]] }
  0x70   :  { %s886_s15 = sld [smem:[#allocation4 + $0xd]]  ;;  %v291_v44 = vstv %s844_s10 }
  0x71   :  { %s894_s16 = sld [smem:[#allocation4 + $0xe]] }
  0x72   :  { %s1208_s17 = sld [smem:[#allocation12_spill]] }
  0x73   :  { %s1209_s18 = sld [smem:[#allocation13_spill]] }
  0x74   :  { %s1210_s19 = sld [smem:[#allocation14_spill]] }
  0x75   :  { %s901_s20 = sld [smem:[#allocation4 + $0xf]] }
  0x76   :  { %s1211_s21 = sld [smem:[#allocation15_spill]] }
  0x77   :  { %s1212_s22 = sld [smem:[#allocation16_spill]] }
  0x78   :  { %s907_s23 = sld [smem:[#allocation6]]  ;;  %v388_v50 = vstv %s1208_s17 }
  0x79   :  { %s913_s24 = sld [smem:[#allocation6 + $0x1]]  ;;  %v406_v51 = vstv %s1209_s18  ;;  %v389_v62 = vmul.f32 %v840_v1, %v388_v50 }
  0x7a   :  { %s1213_s25 = sld [smem:[#allocation23_spill]]  ;;  %v408_v52 = vstv %s1210_s19  ;;  %v407_v63 = vmul.f32 %v406_v51, %v835_v0 }
  0x7b   :  { %s918_s26 = sld [smem:[#allocation6 + $0x2]]  ;;  %v409_v2 = vmul.f32 %v840_v1, %v408_v52  ;;  %v957_v16 = vadd.f32 %v389_v62, %v387_v60 }
  0x7c   :  { %v426_v55 = vstv %s1211_s21  ;;  %s1214_s2 = sld [smem:[#allocation17_spill]] }
  0x7d   :  { %v428_v56 = vstv %s1212_s22  ;;  %s924_s1 = sld [smem:[#allocation6 + $0x3]]  ;;  %v427_v4 = vmul.f32 %v426_v55, %v835_v0  ;;  %v959_v17 = vadd.f32 %v409_v2, %v407_v63  ;;  %v292_v55 = vadd.f32 %v291_v44, %v897_v38 }
  0x7e   :  { %s1215_s27 = sld [smem:[#allocation18_spill]]  ;;  %v429_v5 = vmul.f32 %v840_v1, %v428_v56  ;;  %v198_v7 = vstv %s907_s23 }
  0x7f   :  { %s931_s28 = sld [smem:[#allocation6 + $0x80]]  ;;  %v200_v11 = vstv %s913_s24  ;;  %v199_v19 = vmul.f32 %v198_v7, %v197_v3  ;;  %v293_v25 = vmax.f32 %v292_v55, 0.0 }
  0x80   :  { %v231_v61 = vstv %s1213_s25  ;;  %s937_s29 = sld [smem:[#allocation6 + $0x81]]  ;;  %v967_v21 = vadd.f32 %v429_v5, %v427_v4  ;;  %v201_v23 = vmul.f32 %v200_v11, %v197_v3 }
  0x81   :  { %s942_s30 = sld [smem:[#allocation6 + $0x82]]  ;;  %v232_v13 = vadd.f32 %v231_v61, %v230_v30  ;;  %v202_v15 = vstv %s918_s26  ;;  %v311_v61 = vstv %s850_s3 }
  0x82   :  { %v446_v6 = vstv %s1214_s2  ;;  %s950_s6 = sld [smem:[#allocation6 + $0x83]]  ;;  %v203_v27 = vmul.f32 %v202_v15, %v197_v3 }
  0x83   :  { %s1216_s7 = sld [smem:[#allocation24_spill]]  ;;  %v962_v18 = vmul.f32 %v446_v6, %v835_v0  ;;  %v204_v20 = vstv %s924_s1  ;;  %v233_v30 = vmax.f32 %v232_v13, 0.0 }
  0x84   :  { %v448_v10 = vstv %s1215_s27  ;;  %s954_s8 = sld [smem:[#allocation6 + $0x100]]  ;;  %v205_v31 = vmul.f32 %v204_v20, %v197_v3 }
  0x85   :  { %s964_s9 = sld [smem:[#allocation6 + $0x101]]  ;;  %v970_v22 = vmul.f32 %v840_v1, %v448_v10  ;;  %v214_v24 = vstv %s931_s28 }
  0x86   :  { %s1217_s11 = sld [smem:[#allocation19_spill]]  ;;  %v215_v28 = vmul.f32 %v214_v24, %v213_v12  ;;  %v217_v29 = vstv %s937_s29 }
  0x87   :  { %s972_s17 = sld [smem:[#allocation6 + $0x102]]  ;;  %v218_v32 = vmul.f32 %v217_v29, %v213_v12  ;;  %v220_v35 = vstv %s942_s30 }
  0x88   :  { %s977_s18 = sld [smem:[#allocation6 + $0x103]]  ;;  %v216_v37 = vadd.f32 %v215_v28, %v199_v19  ;;  %v221_v33 = vmul.f32 %v220_v35, %v213_v12  ;;  %v223_v39 = vstv %s950_s6  ;;  %v331_v19 = vstv %s856_s5 }
  0x89   :  { %v271_v26 = vstv %s1216_s7  ;;  %s980_s19 = sld [smem:[#allocation6 + $0x180]]  ;;  %v219_v41 = vadd.f32 %v218_v32, %v201_v23  ;;  %v224_v42 = vmul.f32 %v223_v39, %v213_v12  ;;  %v312_v12 = vadd.f32 %v311_v61, %v926_v58 }
  0x8a   :  { %s984_s21 = sld [smem:[#allocation6 + $0x181]]  ;;  %v272_v40 = vadd.f32 %v271_v26, %v890_v34  ;;  %v234_v43 = vstv %s954_s8  ;;  %v222_v45 = vadd.f32 %v221_v33, %v203_v27  ;;  %v1032_v28 = vadd.f32 %v970_v22, %v962_v18 }
  0x8b   :  { %s988_s22 = sld [smem:[#allocation6 + $0x182]]  ;;  %v235_v46 = vmul.f32 %v234_v43, %v233_v30  ;;  %v237_v47 = vstv %s964_s9  ;;  %v225_v49 = vadd.f32 %v224_v42, %v205_v31  ;;  %v332_v32 = vadd.f32 %v331_v19, %v928_v59 }
  0x8c   :  { %v466_v36 = vstv %s1217_s11  ;;  %s992_s23 = sld [smem:[#allocation6 + $0x183]]  ;;  %v238_v50 = vmul.f32 %v237_v47, %v233_v30  ;;  %v273_v3 = vmax.f32 %v272_v40, 0.0  ;;  %v351_v33 = vstv %s862_s0 }
  0x8d   :  { %s995_s24 = sld [smem:[#allocation6 + $0x200]]  ;;  %v240_v34 = vstv %s972_s17  ;;  %v999_v51 = vmul.f32 %v466_v36, %v835_v0  ;;  %v236_v52 = vadd.f32 %v235_v46, %v216_v37  ;;  %v313_v40 = vmax.f32 %v312_v12, 0.0 }
  0x8e   :  { %s1001_s25 = sld [smem:[#allocation6 + $0x201]]  ;;  %v241_v53 = vmul.f32 %v240_v34, %v233_v30  ;;  %v243_v54 = vstv %s977_s18  ;;  %v239_v56 = vadd.f32 %v238_v50, %v219_v41  ;;  %v352_v47 = vadd.f32 %v351_v33, %v945_v8 }
  0x8f   :  { %s1218_s10 = sld [smem:[#allocation20_spill]]  ;;  %v244_v57 = vmul.f32 %v243_v54, %v233_v30  ;;  %v254_v60 = vstv %s980_s19  ;;  %v371_v34 = vstv %s868_s4  ;;  %v333_v55 = vmax.f32 %v332_v32, 0.0 }
  0x90   :  { %s1005_s26 = sld [smem:[#allocation6 + $0x202]]  ;;  %v242_v62 = vadd.f32 %v241_v53, %v222_v45  ;;  %v255_v63 = vmul.f32 %v254_v60, %v253_v48  ;;  %v257_v2 = vstv %s984_s21 }
  0x91   :  { %s1009_s2 = sld [smem:[#allocation6 + $0x203]]  ;;  %v245_v4 = vadd.f32 %v244_v57, %v225_v49  ;;  %v258_v5 = vmul.f32 %v257_v2, %v253_v48  ;;  %v260_v38 = vstv %s988_s22  ;;  %v372_v2 = vadd.f32 %v371_v34, %v947_v9 }
  0x92   :  { %s1012_s1 = sld [smem:[#allocation6 + $0x280]]  ;;  %v256_v7 = vadd.f32 %v255_v63, %v236_v52  ;;  %v261_v10 = vmul.f32 %v260_v38, %v253_v48  ;;  %v263_v11 = vstv %s992_s23  ;;  %v391_v38 = vstv %s874_s12 }
  0x93   :  { %s1016_s27 = sld [smem:[#allocation6 + $0x281]]  ;;  %v259_v13 = vadd.f32 %v258_v5, %v239_v56  ;;  %v264_v14 = vmul.f32 %v263_v11, %v253_v48  ;;  %v274_v15 = vstv %s995_s24  ;;  %v353_v11 = vmax.f32 %v352_v47, 0.0 }
  0x94   :  { %s1020_s3 = sld [smem:[#allocation6 + $0x282]]  ;;  %v262_v20 = vadd.f32 %v261_v10, %v242_v62  ;;  %v275_v23 = vmul.f32 %v274_v15, %v273_v3  ;;  %v277_v24 = vstv %s1001_s25 }
  0x95   :  { %v468_v6 = vstv %s1218_s10  ;;  %s1024_s28 = sld [smem:[#allocation6 + $0x283]]  ;;  %v265_v26 = vadd.f32 %v264_v14, %v245_v4  ;;  %v278_v27 = vmul.f32 %v277_v24, %v273_v3 }
  0x96   :  { %s1027_s29 = sld [smem:[#allocation6 + $0x300]]  ;;  %v280_v58 = vstv %s1005_s26  ;;  %v276_v29 = vadd.f32 %v275_v23, %v256_v7  ;;  %v1049_v43 = vmul.f32 %v840_v1, %v468_v6  ;;  %v392_v23 = vadd.f32 %v391_v38, %v957_v16 }
  0x97   :  { %s1034_s30 = sld [smem:[#allocation6 + $0x301]]  ;;  %v281_v30 = vmul.f32 %v280_v58, %v273_v3  ;;  %v283_v31 = vstv %s1009_s2  ;;  %v279_v35 = vadd.f32 %v278_v27, %v259_v13  ;;  %v411_v27 = vstv %s878_s13 }
  0x98   :  { %s1038_s5 = sld [smem:[#allocation6 + $0x302]]  ;;  %v284_v36 = vmul.f32 %v283_v31, %v273_v3  ;;  %v294_v37 = vstv %s1012_s1 }
  0x99   :  { %s1042_s6 = sld [smem:[#allocation6 + $0x303]]  ;;  %v282_v39 = vadd.f32 %v281_v30, %v262_v20  ;;  %v295_v18 = vmul.f32 %v294_v37, %v293_v25  ;;  %v297_v22 = vstv %s1016_s27  ;;  %v373_v30 = vmax.f32 %v372_v2, 0.0 }
  0x9a   :  { %s1045_s7 = sld [smem:[#allocation6 + $0x380]]  ;;  %v285_v41 = vadd.f32 %v284_v36, %v265_v26  ;;  %v298_v42 = vmul.f32 %v297_v22, %v293_v25  ;;  %v300_v59 = vstv %s1020_s3 }
  0x9b   :  { %s1051_s8 = sld [smem:[#allocation6 + $0x381]]  ;;  %v296_v44 = vadd.f32 %v295_v18, %v276_v29  ;;  %v301_v45 = vmul.f32 %v300_v59, %v293_v25  ;;  %v303_v46 = vstv %s1024_s28 }
  0x9c   :  { %s1219_s0 = sld [smem:[#allocation21_spill]]  ;;  %v299_v48 = vadd.f32 %v298_v42, %v279_v35  ;;  %v304_v49 = vmul.f32 %v303_v46, %v293_v25  ;;  %v314_v50 = vstv %s1027_s29 }
  0x9d   :  { %s1055_s9 = sld [smem:[#allocation6 + $0x382]]  ;;  %v302_v52 = vadd.f32 %v301_v45, %v282_v39  ;;  %v315_v53 = vmul.f32 %v314_v50, %v313_v40  ;;  %v317_v54 = vstv %s1034_s30  ;;  %v412_v39 = vadd.f32 %v411_v27, %v959_v17 }
  0x9e   :  { %s1059_s11 = sld [smem:[#allocation6 + $0x383]]  ;;  %v305_v56 = vadd.f32 %v304_v49, %v285_v41  ;;  %v318_v57 = vmul.f32 %v317_v54, %v313_v40  ;;  %v320_v8 = vstv %s1038_s5  ;;  %v431_v41 = vstv %s882_s14 }
  0x9f   :  { %s1062_s17 = sld [smem:[#allocation6 + $0x400]]  ;;  %v316_v61 = vadd.f32 %v315_v53, %v296_v44  ;;  %v321_v62 = vmul.f32 %v320_v8, %v313_v40  ;;  %v323_v63 = vstv %s1042_s6  ;;  %v393_v45 = vmax.f32 %v392_v23, 0.0 }
  0xa0   :  { %s1066_s18 = sld [smem:[#allocation6 + $0x401]]  ;;  %v319_v3 = vadd.f32 %v318_v57, %v299_v48  ;;  %v324_v4 = vmul.f32 %v323_v63, %v313_v40  ;;  %v334_v5 = vstv %s1045_s7  ;;  %v470_v48 = vadd.f32 %v1049_v43, %v999_v51 }
  0xa1   :  { %s1070_s4 = sld [smem:[#allocation6 + $0x402]]  ;;  %v322_v6 = vadd.f32 %v321_v62, %v302_v52  ;;  %v335_v7 = vmul.f32 %v334_v5, %v333_v55  ;;  %v337_v10 = vstv %s1051_s8  ;;  %v432_v52 = vadd.f32 %v431_v41, %v967_v21 }
  0xa2   :  { %v486_v60 = vstv %s1219_s0  ;;  %s1074_s19 = sld [smem:[#allocation6 + $0x403]]  ;;  %v325_v12 = vadd.f32 %v324_v4, %v305_v56  ;;  %v338_v13 = vmul.f32 %v337_v10, %v333_v55  ;;  %v451_v56 = vstv %s886_s15 }
  0xa3   :  { %s1077_s21 = sld [smem:[#allocation6 + $0x480]]  ;;  %v340_v9 = vstv %s1055_s9  ;;  %v1081_v14 = vmul.f32 %v486_v60, %v835_v0  ;;  %v336_v15 = vadd.f32 %v335_v7, %v316_v61  ;;  %v413_v43 = vmax.f32 %v412_v39, 0.0 }
  0xa4   :  { %s1083_s22 = sld [smem:[#allocation6 + $0x481]]  ;;  %v341_v19 = vmul.f32 %v340_v9, %v333_v55  ;;  %v343_v20 = vstv %s1059_s11  ;;  %v339_v24 = vadd.f32 %v338_v13, %v319_v3  ;;  %v452_v4 = vadd.f32 %v451_v56, %v1032_v28 }
  0xa5   :  { %s1220_s12 = sld [smem:[#allocation22_spill]]  ;;  %v344_v25 = vmul.f32 %v343_v20, %v333_v55  ;;  %v354_v26 = vstv %s1062_s17  ;;  %v471_v7 = vstv %s894_s16 }
  0xa6   :  { %s1087_s23 = sld [smem:[#allocation6 + $0x482]]  ;;  %v342_v0 = vadd.f32 %v341_v19, %v322_v6  ;;  %v355_v58 = vmul.f32 %v354_v26, %v353_v11  ;;  %v357_v29 = vstv %s1066_s18 }
  0xa7   :  { %s1091_s24 = sld [smem:[#allocation6 + $0x483]]  ;;  %v345_v31 = vadd.f32 %v344_v25, %v325_v12  ;;  %v358_v32 = vmul.f32 %v357_v29, %v353_v11  ;;  %v360_v16 = vstv %s1070_s4  ;;  %v433_v12 = vmax.f32 %v432_v52, 0.0 }
  0xa8   :  { %s1094_s25 = sld [smem:[#allocation6 + $0x500]]  ;;  %v356_v36 = vadd.f32 %v355_v58, %v336_v15  ;;  %v361_v37 = vmul.f32 %v360_v16, %v353_v11  ;;  %v363_v33 = vstv %s1074_s19 }
  0xa9   :  { %s1098_s10 = sld [smem:[#allocation6 + $0x501]]  ;;  %v359_v18 = vadd.f32 %v358_v32, %v339_v24  ;;  %v364_v22 = vmul.f32 %v363_v33, %v353_v11  ;;  %v374_v40 = vstv %s1077_s21  ;;  %v472_v24 = vadd.f32 %v471_v7, %v470_v48 }
  0xaa   :  { %s1102_s13 = sld [smem:[#allocation6 + $0x502]]  ;;  %v362_v42 = vadd.f32 %v361_v37, %v342_v0  ;;  %v375_v59 = vmul.f32 %v374_v40, %v373_v30  ;;  %v377_v44 = vstv %s1083_s22  ;;  %v491_v0 = vstv %s901_s20 }
  0xab   :  { %v488_v35 = vstv %s1220_s12  ;;  %s1106_s26 = sld [smem:[#allocation6 + $0x503]]  ;;  %v365_v46 = vadd.f32 %v364_v22, %v345_v31  ;;  %v378_v47 = vmul.f32 %v377_v44, %v373_v30 }
  0xac   :  { %s1109_s2 = sld [smem:[#allocation6 + $0x580]]  ;;  %v380_v17 = vstv %s1087_s23  ;;  %v376_v49 = vadd.f32 %v375_v59, %v356_v36  ;;  %v489_v62 = vmul.f32 %v840_v1, %v488_v35  ;;  %v473_v59 = vmax.f32 %v472_v24, 0.0 }
  0xad   :  { %s1114_s1 = sld [smem:[#allocation6 + $0x581]]  ;;  %v381_v50 = vmul.f32 %v380_v17, %v373_v30  ;;  %v383_v34 = vstv %s1091_s24  ;;  %v379_v53 = vadd.f32 %v378_v47, %v359_v18 }
  0xae   :  { %s1118_s14 = sld [smem:[#allocation6 + $0x582]]  ;;  %v384_v54 = vmul.f32 %v383_v34, %v373_v30  ;;  %v394_v55 = vstv %s1094_s25  ;;  %v490_v15 = vadd.f32 %v489_v62, %v1081_v14  ;;  %v453_v30 = vmax.f32 %v452_v4, 0.0 }
  0xaf   :  { %s1122_s27 = sld [smem:[#allocation6 + $0x583]]  ;;  %v382_v57 = vadd.f32 %v381_v50, %v362_v42  ;;  %v395_v8 = vmul.f32 %v394_v55, %v393_v45  ;;  %v397_v51 = vstv %s1098_s10 }
  0xb0   :  { %s1125_s3 = sld [smem:[#allocation6 + $0x600]]  ;;  %v385_v60 = vadd.f32 %v384_v54, %v365_v46  ;;  %v398_v61 = vmul.f32 %v397_v51, %v393_v45  ;;  %v400_v21 = vstv %s1102_s13  ;;  %v492_v22 = vadd.f32 %v491_v0, %v490_v15 }
  0xb1   :  { %s1129_s28 = sld [smem:[#allocation6 + $0x601]]  ;;  %v396_v63 = vadd.f32 %v395_v8, %v376_v49  ;;  %v401_v2 = vmul.f32 %v400_v21, %v393_v45  ;;  %v403_v3 = vstv %s1106_s26 }
  0xb2   :  { %s1133_s15 = sld [smem:[#allocation6 + $0x602]]  ;;  %v399_v5 = vadd.f32 %v398_v61, %v379_v53  ;;  %v404_v38 = vmul.f32 %v403_v3, %v393_v45  ;;  %v414_v6 = vstv %s1109_s2  ;;  %v493_v55 = vmax.f32 %v492_v22, 0.0 }
  0xb3   :  { %s1137_s29 = sld [smem:[#allocation6 + $0x603]]  ;;  %v402_v10 = vadd.f32 %v401_v2, %v382_v57  ;;  %v415_v11 = vmul.f32 %v414_v6, %v413_v43  ;;  %v417_v1 = vstv %s1114_s1 }
  0xb4   :  { %s1140_s30 = sld [smem:[#allocation6 + $0x680]]  ;;  %v405_v13 = vadd.f32 %v404_v38, %v385_v60  ;;  %v418_v9 = vmul.f32 %v417_v1, %v413_v43  ;;  %v420_v28 = vstv %s1118_s14 }
  0xb5   :  { %s1144_s5 = sld [smem:[#allocation6 + $0x681]]  ;;  %v416_v19 = vadd.f32 %v415_v11, %v396_v63  ;;  %v421_v20 = vmul.f32 %v420_v28, %v413_v43  ;;  %v423_v23 = vstv %s1122_s27 }
  0xb6   :  { %s1147_s16 = sld [smem:[#allocation6 + $0x682]]  ;;  %v419_v25 = vadd.f32 %v418_v9, %v399_v5  ;;  %v424_v26 = vmul.f32 %v423_v23, %v413_v43  ;;  %v434_v27 = vstv %s1125_s3 }
  0xb7   :  { %s1151_s6 = sld [smem:[#allocation6 + $0x683]]  ;;  %v422_v58 = vadd.f32 %v421_v20, %v402_v10  ;;  %v435_v29 = vmul.f32 %v434_v27, %v433_v12  ;;  %v437_v14 = vstv %s1129_s28 }
  0xb8   :  { %s1154_s7 = sld [smem:[#allocation6 + $0x700]]  ;;  %v425_v31 = vadd.f32 %v424_v26, %v405_v13  ;;  %v438_v32 = vmul.f32 %v437_v14, %v433_v12  ;;  %v440_v16 = vstv %s1133_s15 }
  0xb9   :  { %s1157_s8 = sld [smem:[#allocation6 + $0x701]]  ;;  %v436_v35 = vadd.f32 %v435_v29, %v416_v19  ;;  %v441_v36 = vmul.f32 %v440_v16, %v433_v12  ;;  %v443_v37 = vstv %s1137_s29 }
  0xba   :  { %s1160_s20 = sld [smem:[#allocation6 + $0x702]]  ;;  %v439_v33 = vadd.f32 %v438_v32, %v419_v25  ;;  %v444_v39 = vmul.f32 %v443_v37, %v433_v12  ;;  %v454_v18 = vstv %s1140_s30 }
  0xbb   :  { %s1163_s0 = sld [smem:[#allocation6 + $0x703]]  ;;  %v442_v40 = vadd.f32 %v441_v36, %v422_v58  ;;  %v455_v41 = vmul.f32 %v454_v18, %v453_v30  ;;  %v457_v42 = vstv %s1144_s5 }
  0xbc   :  { %s1166_s9 = sld [smem:[#allocation6 + $0x780]]  ;;  %v445_v44 = vadd.f32 %v444_v39, %v425_v31  ;;  %v458_v45 = vmul.f32 %v457_v42, %v453_v30  ;;  %v460_v46 = vstv %s1147_s16 }
  0xbd   :  { %s640_s11 = sld [smem:[#allocation6 + $0x781]]  ;;  %v456_v47 = vadd.f32 %v455_v41, %v436_v35  ;;  %v461_v17 = vmul.f32 %v460_v46, %v453_v30  ;;  %v463_v48 = vstv %s1151_s6 }
  0xbe   :  { %s641_s17 = sld [smem:[#allocation6 + $0x782]]  ;;  %v459_v49 = vadd.f32 %v458_v45, %v439_v33  ;;  %v464_v50 = vmul.f32 %v463_v48, %v453_v30  ;;  %v474_v34 = vstv %s1154_s7 }
  0xbf   :  { %s642_s18 = sld [smem:[#allocation6 + $0x783]]  ;;  %v462_v52 = vadd.f32 %v461_v17, %v442_v40  ;;  %v475_v53 = vmul.f32 %v474_v34, %v473_v59  ;;  %v477_v54 = vstv %s1157_s8 }
  0xc0   :  { %s182_s4 = sld [smem:[#allocation7]]  ;;  %v465_v56 = vadd.f32 %v464_v50, %v445_v44  ;;  %v478_v57 = vmul.f32 %v477_v54, %v473_v59  ;;  %v480_v8 = vstv %s1160_s20 }
  0xc1   :  { %s643_s19 = sld [smem:[#allocation7 + $0x1]]  ;;  %v476_v51 = vadd.f32 %v475_v53, %v456_v47  ;;  %v481_v43 = vmul.f32 %v480_v8, %v473_v59  ;;  %v483_v60 = vstv %s1163_s0 }
  0xc2   :  { %s644_s21 = sld [smem:[#allocation7 + $0x2]]  ;;  %v479_v61 = vadd.f32 %v478_v57, %v459_v49  ;;  %v484_v21 = vmul.f32 %v483_v60, %v473_v59  ;;  %v494_v62 = vstv %s1166_s9 }
  0xc3   :  { %s645_s22 = sld [smem:[#allocation7 + $0x3]]  ;;  %v482_v63 = vadd.f32 %v481_v43, %v462_v52  ;;  %v495_v2 = vmul.f32 %v494_v62, %v493_v55  ;;  %v497_v3 = vstv %s640_s11 }
  0xc4   :  { %v485_v4 = vadd.f32 %v484_v21, %v465_v56  ;;  %v498_v5 = vmul.f32 %v497_v3, %v493_v55  ;;  %v500_v38 = vstv %s641_s17  ;;  %s1221_s24 = sld [smem:[#allocation25_spill]] }
  0xc5   :  { %v496_v6 = vadd.f32 %v495_v2, %v476_v51  ;;  %v501_v7 = vmul.f32 %v500_v38, %v493_v55  ;;  %v503_v10 = vstv %s642_s18 }
  0xc6   :  { %v499_v11 = vadd.f32 %v498_v5, %v479_v61  ;;  %v504_v1 = vmul.f32 %v503_v10, %v493_v55  ;;  %v506_v12 = vstv %s182_s4 }
  0xc7   :  { %v502_v13 = vadd.f32 %v501_v7, %v482_v63  ;;  %v507_v9 = vadd.f32 %v506_v12, %v496_v6  ;;  %v509_v28 = vstv %s643_s19 }
  0xc8   :  { %v505_v15 = vadd.f32 %v504_v1, %v485_v4  ;;  %v510_v19 = vadd.f32 %v509_v28, %v499_v11  ;;  %v513_v20 = vstv %s644_s21 }
  0xc9   :  { %v514_v23 = vadd.f32 %v513_v20, %v502_v13  ;;  %v518_v24 = vstv %s645_s22 }
  0xca   :  { %508 = vst [vmem:[%s1221_s24] sm:$0xff] %v507_v9  ;;  %647 = vst [vmem:[%s1221_s24 + $0x8] sm:$0xff] %v510_v19  ;;  %v519_v25 = vadd.f32 %v518_v24, %v505_v15 }
  0xcb   :  { %648 = vst [vmem:[%s1221_s24 + $0x10] sm:$0xff] %v514_v23 }
  0xcc   :  { %649 = vst [vmem:[%s1221_s24 + $0x18] sm:$0xff] %v519_v25 }
  0xcd   :  { %527 = vsyncpa [#allocation3], 1 }
  0xce   :  { %528 = vsyncpa [#allocation5], 1 }
  0xcf   :  { %529 = vsyncpa [#allocation8], 1 }

</bundles_post_ra>
